<compile_context>
chip_gen: v5e
topology: v5e:2x2
jax: 0.10.0
libtpu: 0.0.40
codegen_flags: <defaults>
</compile_context>

<pallas_src>
import jax
import jax.numpy as jnp
from jax import lax
from jax.experimental import pallas as pl
from jax.experimental.pallas import tpu as pltpu

D_IN, H1, H2, D_OUT = 784, 512, 256, 1
NEG_SLOPE = 0.01  # default negative_slope of nn.LeakyReLU()


def disc_kernel(x_ref, w1_ref, b1_ref, w2_ref, b2_ref, w3_ref, b3_ref, o_ref):
    # x tile: (tb, 784) bf16; weights stay VMEM-resident across all batch tiles.
    x = x_ref[...]

    # Layer 1: bf16 MXU matmul, f32 accumulation; LeakyReLU via max (2 VALU ops).
    h1 = jnp.dot(x, w1_ref[...], preferred_element_type=jnp.float32) + b1_ref[...]
    h1 = jnp.maximum(h1, NEG_SLOPE * h1)           # Dropout -> identity (eval mode)

    # Layer 2: bf16 MXU matmul, f32 accumulation.
    h2 = jnp.dot(h1.astype(jnp.bfloat16), w2_ref[...],
                 preferred_element_type=jnp.float32) + b2_ref[...]
    h2 = jnp.maximum(h2, NEG_SLOPE * h2)           # Dropout -> identity (eval mode)

    # Layer 3 (out_features == 1): transposed-RHS matmul (the Q.K^T pattern) so
    # the per-row logit lands with batch on the lane axis -> lane-dense (1, tb)
    # output, no (tb, 1) masked stores / lane-padded writeback.  Row 0 of w3_ref
    # is the real weight row; rows 1-7 are zero padding.
    s = lax.dot_general(
        w3_ref[...], h2.astype(jnp.bfloat16),
        dimension_numbers=(((1,), (1,)), ((), ())),
        preferred_element_type=jnp.float32)        # (8, tb)
    logit = s[0:1, :] + b3_ref[...]                # (1, tb)

    # Sigmoid in f32 (exp on the EUP); o_ref block is (1, 1, tb).
    o_ref[0] = jax.nn.sigmoid(logit)


def _round_up(n, m):
    return ((n + m - 1) // m) * m


def _choose_tiling(b, block_b):
    """Pick (tile_rows, padded_batch) — big tiles, >=2 even tiles when non-trivial."""
    b8 = _round_up(max(b, 1), 8)
    nb = pl.cdiv(b8, block_b)
    # v7x megacore: with a single grid step one TensorCore idles; keep >= 2 (even)
    # tiles once there is enough work for the split to be worth it.
    if b8 >= 128:
        nb = max(nb, 2)
    if nb > 1 and nb % 2:
        nb += 1
    tb = _round_up(pl.cdiv(b8, nb), 8)
    return tb, nb * tb


def discriminator_forward(x, params, *, block_b=2048):
    """x: [B, 784] float32 -> [B, 1] float32."""
    w1, b1, w2, b2, w3_blk, b3 = params
    B = x.shape[0]

    tb, b_pad = _choose_tiling(B, block_b)
    nb = b_pad // tb

    x = x.astype(jnp.bfloat16)
    if b_pad != B:
        x = jnp.pad(x, ((0, b_pad - B), (0, 0)))

    resident = lambda shape: pl.BlockSpec(shape, lambda i: (0, 0))

    out = pl.pallas_call(
        disc_kernel,
        out_shape=jax.ShapeDtypeStruct((nb, 1, tb), jnp.float32),
        grid=(nb,),
        in_specs=[
            pl.BlockSpec((tb, D_IN), lambda i: (i, 0)),  # x tile (bf16)
            resident((D_IN, H1)),      # w1 (bf16)
            resident((1, H1)),         # b1 (f32)
            resident((H1, H2)),        # w2 (bf16)
            resident((1, H2)),         # b2 (f32)
            resident((8, H2)),         # w3 as an (8, 256) bf16 block (row 0 real)
            resident((1, 1)),          # b3 (f32)
        ],
        # Lane-dense output: one (1, tb) row per batch tile.
        out_specs=pl.BlockSpec((1, 1, tb), lambda i: (i, 0, 0)),
        compiler_params=pltpu.CompilerParams(
            dimension_semantics=("parallel",),
            vmem_limit_bytes=32 * 1024 * 1024,   # covers tb=2048 on v5e's 16MiB default
        ),
    )(x, w1, b1, w2, b2, w3_blk, b3)

    return out.reshape(b_pad, 1)[:B]


def init_params(key):
    """PyTorch-style nn.Linear init (U[-1/sqrt(fan_in), 1/sqrt(fan_in)]).

    w1/w2 stored bf16 feature-last (MXU operands); biases f32; w3 stored as an
    (8, 256) bf16 block whose row 0 is the real weight row (rows 1-7 zero).
    """
    ks = jax.random.split(key, 6)

    def lin(kw, kb, fan_in, fan_out):
        bound = 1.0 / jnp.sqrt(fan_in)
        w = jax.random.uniform(kw, (fan_in, fan_out), jnp.float32, -bound, bound)
        b = jax.random.uniform(kb, (1, fan_out), jnp.float32, -bound, bound)
        return w, b

    w1, b1 = lin(ks[0], ks[1], D_IN, H1)
    w2, b2 = lin(ks[2], ks[3], H1, H2)
    w3, b3 = lin(ks[4], ks[5], H2, D_OUT)

    w3_blk = jnp.zeros((8, H2), jnp.float32).at[0].set(w3[:, 0]).astype(jnp.bfloat16)
    return (w1.astype(jnp.bfloat16), b1,
            w2.astype(jnp.bfloat16), b2,
            w3_blk, b3)


def reference_forward(x, params):
    """Plain-JAX reference with identical precision choices."""
    w1, b1, w2, b2, w3_blk, b3 = params
    h1 = jnp.dot(x.astype(jnp.bfloat16), w1, preferred_element_type=jnp.float32) + b1
    h1 = jnp.maximum(h1, NEG_SLOPE * h1)
    h2 = jnp.dot(h1.astype(jnp.bfloat16), w2, preferred_element_type=jnp.float32) + b2
    h2 = jnp.maximum(h2, NEG_SLOPE * h2)
    logit = jnp.dot(h2.astype(jnp.bfloat16), w3_blk[0:1].T,
                    preferred_element_type=jnp.float32) + b3
    return jax.nn.sigmoid(logit)


if __name__ == "__main__":
    key = jax.random.PRNGKey(0)
    k_param, k_x = jax.random.split(key)
    params = init_params(k_param)

    # Tiny batch (single 8-row tile) and a small multi-tile batch (exercises the
    # adaptive tiling / two-tile parallel split / lane-dense output path).
    for batch in (2, 256):
        kx = jax.random.fold_in(k_x, batch)
        x = jax.random.normal(kx, (batch, D_IN), jnp.float32)

        out = jax.block_until_ready(discriminator_forward(x, params))
        ref = reference_forward(x, params)

        assert out.shape == (batch, D_OUT), out.shape
        assert jnp.allclose(out, ref, atol=1e-3, rtol=1e-3), (batch, out, ref)

    print("KERNEL_OK")
</pallas_src>

<mosaic_0001>
module attributes {stable_mosaic.version = 11 : i64} {
  func.func @disc_kernel(%arg0: i32, %arg1: memref<8x784xbf16, #tpu.memory_space<vmem>>, %arg2: memref<784x512xbf16, #tpu.memory_space<vmem>>, %arg3: memref<1x512xf32, #tpu.memory_space<vmem>>, %arg4: memref<512x256xbf16, #tpu.memory_space<vmem>>, %arg5: memref<1x256xf32, #tpu.memory_space<vmem>>, %arg6: memref<8x256xbf16, #tpu.memory_space<vmem>>, %arg7: memref<1x1xf32, #tpu.memory_space<vmem>>, %arg8: memref<1x1x8xf32, #tpu.memory_space<vmem>>) attributes {dimension_semantics = [#tpu.dimension_semantics<parallel>], iteration_bounds = array<i64: 1>, scalar_prefetch = 0 : i64, scratch_operands = 0 : i64, tpu.core_type = #tpu.core_type<tc>, window_params = [{transform_indices = @transform_0, window_bounds = array<i64: 8, 784>}, {pipeline_mode = #tpu.pipeline_mode<synchronous>, transform_indices = @transform_1, window_bounds = array<i64: 784, 512>}, {pipeline_mode = #tpu.pipeline_mode<synchronous>, transform_indices = @transform_2, window_bounds = array<i64: 1, 512>}, {pipeline_mode = #tpu.pipeline_mode<synchronous>, transform_indices = @transform_3, window_bounds = array<i64: 512, 256>}, {pipeline_mode = #tpu.pipeline_mode<synchronous>, transform_indices = @transform_4, window_bounds = array<i64: 1, 256>}, {pipeline_mode = #tpu.pipeline_mode<synchronous>, transform_indices = @transform_5, window_bounds = array<i64: 8, 256>}, {pipeline_mode = #tpu.pipeline_mode<synchronous>, transform_indices = @transform_6, window_bounds = array<i64: 1, 1>}, {transform_indices = @transform_7, window_bounds = array<i64: 1, 1, 8>}]} {
    %c0 = arith.constant 0 : index
    %c0_0 = arith.constant 0 : index
    %0 = vector.load %arg1[%c0, %c0_0] : memref<8x784xbf16, #tpu.memory_space<vmem>>, vector<8x784xbf16>
    %c0_1 = arith.constant 0 : index
    %c0_2 = arith.constant 0 : index
    %1 = vector.load %arg2[%c0_1, %c0_2] : memref<784x512xbf16, #tpu.memory_space<vmem>>, vector<784x512xbf16>
    %cst = arith.constant dense<0.000000e+00> : vector<8x512xf32>
    %2 = tpu.matmul %0, %1, %cst {dimension_numbers = #tpu.dot_dimension_numbers<[1], [0], [0], [1], [0, 0, 1, 1], [], []>} : vector<8x784xbf16>, vector<784x512xbf16>, vector<8x512xf32> -> vector<8x512xf32>
    %c0_3 = arith.constant 0 : index
    %c0_4 = arith.constant 0 : index
    %3 = vector.load %arg3[%c0_3, %c0_4] : memref<1x512xf32, #tpu.memory_space<vmem>>, vector<1x512xf32>
    %4 = vector.broadcast %3 : vector<1x512xf32> to vector<8x512xf32>
    %5 = arith.addf %2, %4 : vector<8x512xf32>
    %cst_5 = arith.constant 0.00999999977 : f32
    %6 = vector.broadcast %cst_5 : f32 to vector<8x512xf32>
    %7 = arith.mulf %6, %5 : vector<8x512xf32>
    %8 = arith.maximumf %5, %7 : vector<8x512xf32>
    %9 = arith.truncf %8 : vector<8x512xf32> to vector<8x512xbf16>
    %c0_6 = arith.constant 0 : index
    %c0_7 = arith.constant 0 : index
    %10 = vector.load %arg4[%c0_6, %c0_7] : memref<512x256xbf16, #tpu.memory_space<vmem>>, vector<512x256xbf16>
    %cst_8 = arith.constant dense<0.000000e+00> : vector<8x256xf32>
    %11 = tpu.matmul %9, %10, %cst_8 {dimension_numbers = #tpu.dot_dimension_numbers<[1], [0], [0], [1], [0, 0, 1, 1], [], []>} : vector<8x512xbf16>, vector<512x256xbf16>, vector<8x256xf32> -> vector<8x256xf32>
    %c0_9 = arith.constant 0 : index
    %c0_10 = arith.constant 0 : index
    %12 = vector.load %arg5[%c0_9, %c0_10] : memref<1x256xf32, #tpu.memory_space<vmem>>, vector<1x256xf32>
    %13 = vector.broadcast %12 : vector<1x256xf32> to vector<8x256xf32>
    %14 = arith.addf %11, %13 : vector<8x256xf32>
    %cst_11 = arith.constant 0.00999999977 : f32
    %15 = vector.broadcast %cst_11 : f32 to vector<8x256xf32>
    %16 = arith.mulf %15, %14 : vector<8x256xf32>
    %17 = arith.maximumf %14, %16 : vector<8x256xf32>
    %c0_12 = arith.constant 0 : index
    %c0_13 = arith.constant 0 : index
    %18 = vector.load %arg6[%c0_12, %c0_13] : memref<8x256xbf16, #tpu.memory_space<vmem>>, vector<8x256xbf16>
    %19 = arith.truncf %17 : vector<8x256xf32> to vector<8x256xbf16>
    %cst_14 = arith.constant dense<0.000000e+00> : vector<8x8xf32>
    %20 = tpu.matmul %18, %19, %cst_14 {dimension_numbers = #tpu.dot_dimension_numbers<[1], [1], [0], [0], [0, 0, 1, 0], [], []>} : vector<8x256xbf16>, vector<8x256xbf16>, vector<8x8xf32> -> vector<8x8xf32>
    %21 = vector.extract_strided_slice %20 {offsets = [0, 0], sizes = [1, 8], strides = [1, 1]} : vector<8x8xf32> to vector<1x8xf32>
    %c0_15 = arith.constant 0 : index
    %c0_16 = arith.constant 0 : index
    %22 = vector.load %arg7[%c0_15, %c0_16] : memref<1x1xf32, #tpu.memory_space<vmem>>, vector<1x1xf32>
    %23 = vector.broadcast %22 : vector<1x1xf32> to vector<1x8xf32>
    %24 = arith.addf %21, %23 : vector<1x8xf32>
    %25 = arith.negf %24 : vector<1x8xf32>
    %26 = math.exp %25 : vector<1x8xf32>
    %cst_17 = arith.constant 1.000000e+00 : f32
    %27 = vector.broadcast %cst_17 : f32 to vector<1x8xf32>
    %28 = arith.addf %27, %26 : vector<1x8xf32>
    %29 = arith.divf %27, %28 : vector<1x8xf32>
    %c0_18 = arith.constant 0 : index
    %c0_19 = arith.constant 0 : index
    %c0_20 = arith.constant 0 : index
    %30 = vector.load %arg8[%c0_18, %c0_19, %c0_20] : memref<1x1x8xf32, #tpu.memory_space<vmem>>, vector<1x1x8xf32>
    %31 = vector.shape_cast %30 : vector<1x1x8xf32> to vector<1x8xf32>
    %32 = vector.shape_cast %29 : vector<1x8xf32> to vector<1x1x8xf32>
    tpu.vector_store %arg8[%c0_18, %c0_19, %c0_20], %32 {strides = array<i32>} : memref<1x1x8xf32, #tpu.memory_space<vmem>>, vector<1x1x8xf32>,
    return
  }
  func.func @transform_0(%arg0: i32) -> (i32, i32) {
    %c0_i32 = arith.constant 0 : i32
    %c0_i32_0 = arith.constant 0 : i32
    return %arg0, %c0_i32 : i32, i32
  }
  func.func @transform_1(%arg0: i32) -> (i32, i32) {
    %c0_i32 = arith.constant 0 : i32
    %c0_i32_0 = arith.constant 0 : i32
    %c0_i32_1 = arith.constant 0 : i32
    return %c0_i32, %c0_i32_0 : i32, i32
  }
  func.func @transform_2(%arg0: i32) -> (i32, i32) {
    %c0_i32 = arith.constant 0 : i32
    %c0_i32_0 = arith.constant 0 : i32
    %c0_i32_1 = arith.constant 0 : i32
    return %c0_i32, %c0_i32_0 : i32, i32
  }
  func.func @transform_3(%arg0: i32) -> (i32, i32) {
    %c0_i32 = arith.constant 0 : i32
    %c0_i32_0 = arith.constant 0 : i32
    %c0_i32_1 = arith.constant 0 : i32
    return %c0_i32, %c0_i32_0 : i32, i32
  }
  func.func @transform_4(%arg0: i32) -> (i32, i32) {
    %c0_i32 = arith.constant 0 : i32
    %c0_i32_0 = arith.constant 0 : i32
    %c0_i32_1 = arith.constant 0 : i32
    return %c0_i32, %c0_i32_0 : i32, i32
  }
  func.func @transform_5(%arg0: i32) -> (i32, i32) {
    %c0_i32 = arith.constant 0 : i32
    %c0_i32_0 = arith.constant 0 : i32
    %c0_i32_1 = arith.constant 0 : i32
    return %c0_i32, %c0_i32_0 : i32, i32
  }
  func.func @transform_6(%arg0: i32) -> (i32, i32) {
    %c0_i32 = arith.constant 0 : i32
    %c0_i32_0 = arith.constant 0 : i32
    %c0_i32_1 = arith.constant 0 : i32
    return %c0_i32, %c0_i32_0 : i32, i32
  }
  func.func @transform_7(%arg0: i32) -> (i32, i32, i32) {
    %c0_i32 = arith.constant 0 : i32
    %c0_i32_0 = arith.constant 0 : i32
    %c0_i32_1 = arith.constant 0 : i32
    return %arg0, %c0_i32, %c0_i32_0 : i32, i32, i32
  }
}

</mosaic_0001>

<bundles_post_ra>
// kernel: tpu_custom_call.1
= control target key start
LH: loop header
LB: loop body
LE: loop exit
PB: predicated region body
PF: predicated region fallthrough
CT: control target
= control target key end

     0   :  { %s3894_s0 = inlined_call_operand.hbm [shape: bf16[8,784], index: 0, kind: input, shape index: {}]   ;;  %s3895_s1 = inlined_call_operand.hbm [shape: bf16[784,512], index: 1, kind: input, shape index: {}]   ;;  %s3896_s2 = inlined_call_operand.hbm [shape: f32[1,512], index: 2, kind: input, shape index: {}]   ;;  %s3897_s3 = inlined_call_operand.hbm [shape: bf16[512,256], index: 3, kind: input, shape index: {}]   ;;  %s3898_s4 = inlined_call_operand.vmem [shape: f32[1,256], index: 4, kind: input, shape index: {}]   ;;  %s3899_s5 = inlined_call_operand.hbm [shape: bf16[8,256], index: 5, kind: input, shape index: {}]   ;;  %s3900_s6 = inlined_call_operand.<no memory space> [shape: f32[1,1], index: 6, kind: input, shape index: {}]   ;;  %s3901_s7 = inlined_call_operand.hbm [shape: f32[1,1,8], index: 7, kind: output, shape index: {}]  }
   0x1   :  { %v12_v0 = vstv %s3900_s6 }
   0x2   :  { %13 = vst [vmem:[#allocation2] sm:$0x1] %v12_v0 }
   0x3   :  { %14 = vsyncpa [#allocation4], 0 }
   0x4   :  { %15 = vsyncpa [#allocation7], 0 }
   0x5   :  { %16 = vsyncpa [#allocation10], 0  ;;  %s33_s28 = sshll.u32 %s3895_s1, 4  ;;  %s34_s28 = int_to_ptr.hbm [resolvable:$true] %s33_s28 }
   0x6   :  { %17 = vsyncpa [#allocation5], 0  ;;  %s3751_s29 = smov [#allocation6]   ;;  %s57_s10 = sshll.u32 %s3897_s3, 4  ;;  %s58_s10 = int_to_ptr.hbm [resolvable:$true] %s57_s10 }
   0x7   :  { %s35_s30 = sshll.u32 %s3751_s29, 4  ;;  %s3752_s11 = smov 256   ;;  %s36_s30 = int_to_ptr.vmem [resolvable:$true] %s35_s30 }
   0x8   :  { %s3753_s12 = smov 16   ;;  %s3754_s6 = smov [#allocation9]  }
   0x9   :  { %41 = dma.hbm_to_vmem [thread:$0]  %s34_s28, 25088, %s36_s30, [#allocation7], %s3752_s11, %s3752_s11, %s3753_s12  }
   0xa   :  { %s59_s13 = sshll.u32 %s3754_s6, 4  ;;  %s3755_s14 = smov 128   ;;  %s60_s13 = int_to_ptr.vmem [resolvable:$true] %s59_s13 }
   0xb   :  { %s3756_s15 = smov 8   ;;  %s23_s17 = sshll.u32 %s3894_s0, 4  ;;  %s24_s17 = int_to_ptr.hbm [resolvable:$true] %s23_s17 }
   0xc   :  { %65 = dma.hbm_to_vmem [thread:$0]  %s58_s10, 8192, %s60_s13, [#allocation10], %s3755_s14, %s3755_s14, %s3756_s15  }
   0xd   :  { %s3757_s18 = smov [#allocation3]   ;;  %s47_s21 = sshll.u32 %s3896_s2, 4  ;;  %s48_s21 = int_to_ptr.hbm [resolvable:$true] %s47_s21 }
   0xe   :  { %s25_s19 = sshll.u32 %s3757_s18, 4  ;;  %s3758_s22 = smov [#allocation8]   ;;  %s26_s19 = int_to_ptr.vmem [resolvable:$true] %s25_s19 }
   0xf   :  { %28 = dma.hbm_to_vmem [thread:$0]  %s24_s17, 448, %s26_s19, [#allocation4]  }
  0x10   :  { %s49_s23 = sshll.u32 %s3758_s22, 4  ;;  %s73_s26 = sshll.u32 %s3899_s5, 4  ;;  %s50_s23 = int_to_ptr.vmem [resolvable:$true] %s49_s23  ;;  %s74_s26 = int_to_ptr.hbm [resolvable:$true] %s73_s26 }
  0x11   :  { %52 = dma.hbm_to_vmem [thread:$0]  %s48_s21, 64, %s50_s23, [#allocation7]  }
  0x12   :  { %s3759_s0 = smov [#allocation11]  }
  0x13   :  { %s75_s27 = sshll.u32 %s3759_s0, 4  ;;  %s76_s27 = int_to_ptr.vmem [resolvable:$true] %s75_s27 }
  0x14   :  { %78 = dma.hbm_to_vmem [thread:$0]  %s74_s26, 128, %s76_s27, [#allocation10]  }
  0x15   :  { %3743 = dma.done.wait [#allocation4], 448  }
  0x16   :  { %3744 = vsyncadd [#allocation4], 4294966848 }
  0x17   :  { %3745 = dma.done.wait [#allocation7], 25152  }
  0x18   :  { %3746 = vsyncadd [#allocation7], 4294942144 }
  0x19   :  { %3747 = dma.done.wait [#allocation10], 8320  }
  0x1a   :  { %3748 = vsyncadd [#allocation10], 4294958976  ;;  %v2392_v1 = vld [vmem:[#allocation6 + $0xe0] sm:$0xf]  ;;  %v3353_v2 = vld [vmem:[#allocation6 + $0xec] sm:$0xf0] }
  0x1b   :  { %v2520_v3 = vld [vmem:[#allocation6 + $0x1e0] sm:$0xf]  ;;  %v2393_v4 = vor.u32 %v3353_v2, %v2392_v1  ;;  %v3385_v5 = vld [vmem:[#allocation6 + $0x1ec] sm:$0xf0]  ;;  %vm1316_vm0 = vcmask 130048   ;;  %s2266_s8 = sshll.u32 %s3901_s7, 4  ;;  %s2267_s8 = int_to_ptr.hbm [resolvable:$true] %s2266_s8 }
  0x1c   :  { %v2648_v6 = vld [vmem:[#allocation6 + $0x2e0] sm:$0xf]  ;;  %v3417_v7 = vld [vmem:[#allocation6 + $0x2ec] sm:$0xf0]  ;;  %v2521_v8 = vor.u32 %v3385_v5, %v2520_v3  ;;  %vm2257_vm4 = vcmask 57344  }
  0x1d   :  { %v2649_v9 = vor.u32 %v3417_v7, %v2648_v6  ;;  %v2776_v10 = vld [vmem:[#allocation6 + $0x3e0] sm:$0xf]  ;;  %v3449_v11 = vld [vmem:[#allocation6 + $0x3ec] sm:$0xf0]  ;;  %1320 = vmatpush.bf16.msra.mxu0 %v2393_v4 }
  0x1e   :  { %v2376_v12 = vld [vmem:[#allocation6 + $0xc0] sm:$0xf]  ;;  %v2777_v13 = vor.u32 %v3449_v11, %v2776_v10  ;;  %v3349_v14 = vld [vmem:[#allocation6 + $0xcc] sm:$0xf0]  ;;  %1333 = vmatpush.bf16.msra.mxu1 %v2521_v8 }
  0x1f   :  { %v2504_v15 = vld [vmem:[#allocation6 + $0x1c0] sm:$0xf]  ;;  %v3381_v16 = vld [vmem:[#allocation6 + $0x1cc] sm:$0xf0]  ;;  %1346 = vmatpush.bf16.msra.mxu2 %v2649_v9  ;;  %v2377_v17 = vor.u32 %v3349_v14, %v2376_v12 }
  0x20   :  { %v2505_v18 = vor.u32 %v3381_v16, %v2504_v15  ;;  %v2632_v19 = vld [vmem:[#allocation6 + $0x2c0] sm:$0xf]  ;;  %v3413_v20 = vld [vmem:[#allocation6 + $0x2cc] sm:$0xf0]  ;;  %1359 = vmatpush.bf16.msra.mxu3 %v2777_v13 }
  0x21   :  { %v2760_v21 = vld [vmem:[#allocation6 + $0x3c0] sm:$0xf]  ;;  %v2633_v22 = vor.u32 %v3413_v20, %v2632_v19  ;;  %v3445_v23 = vld [vmem:[#allocation6 + $0x3cc] sm:$0xf0]  ;;  %1321 = vmatpush.bf16.msra.mxu0 %v2377_v17 }
  0x22   :  { %v2360_v24 = vld [vmem:[#allocation6 + $0xa0] sm:$0xf]  ;;  %v3345_v25 = vld [vmem:[#allocation6 + $0xac] sm:$0xf0]  ;;  %v2761_v26 = vor.u32 %v3445_v23, %v2760_v21  ;;  %1334 = vmatpush.bf16.msra.mxu1 %v2505_v18 }
  0x23   :  { %v2488_v27 = vld [vmem:[#allocation6 + $0x1a0] sm:$0xf]  ;;  %v3377_v28 = vld [vmem:[#allocation6 + $0x1ac] sm:$0xf0]  ;;  %v2361_v30 = vor.u32 %v3345_v25, %v2360_v24  ;;  %1347 = vmatpush.bf16.msra.mxu2 %v2633_v22 }
  0x24   :  { %v2616_v29 = vld [vmem:[#allocation6 + $0x2a0] sm:$0xf]  ;;  %v3409_v31 = vld [vmem:[#allocation6 + $0x2ac] sm:$0xf0]  ;;  %v2489_v34 = vor.u32 %v3377_v28, %v2488_v27  ;;  %1360 = vmatpush.bf16.msra.mxu3 %v2761_v26 }
  0x25   :  { %v2744_v32 = vld [vmem:[#allocation6 + $0x3a0] sm:$0xf]  ;;  %v3441_v33 = vld [vmem:[#allocation6 + $0x3ac] sm:$0xf0]  ;;  %v2617_v35 = vor.u32 %v3409_v31, %v2616_v29  ;;  %1322 = vmatpush.bf16.msra.mxu0 %v2361_v30 }
  0x26   :  { %v2344_v36 = vld [vmem:[#allocation6 + $0x80] sm:$0xf]  ;;  %v3341_v37 = vld [vmem:[#allocation6 + $0x8c] sm:$0xf0]  ;;  %v2745_v39 = vor.u32 %v3441_v33, %v2744_v32  ;;  %1335 = vmatpush.bf16.msra.mxu1 %v2489_v34 }
  0x27   :  { %v2472_v38 = vld [vmem:[#allocation6 + $0x180] sm:$0xf]  ;;  %v3373_v40 = vld [vmem:[#allocation6 + $0x18c] sm:$0xf0]  ;;  %v2345_v45 = vor.u32 %v3341_v37, %v2344_v36  ;;  %1348 = vmatpush.bf16.msra.mxu2 %v2617_v35  ;;  %v3351_v35 = vld [vmem:[#allocation6 + $0xe4] sm:$0xf] }
  0x28   :  { %v2600_v41 = vld [vmem:[#allocation6 + $0x280] sm:$0xf]  ;;  %v3405_v42 = vld [vmem:[#allocation6 + $0x28c] sm:$0xf0]  ;;  %v2473_v46 = vor.u32 %v3373_v40, %v2472_v38  ;;  %1361 = vmatpush.bf16.msra.mxu3 %v2745_v39  ;;  %v2394_v36 = vld [vmem:[#allocation6 + $0xf0] sm:$0xf0] }
  0x29   :  { %v2728_v43 = vld [vmem:[#allocation6 + $0x380] sm:$0xf]  ;;  %v3437_v44 = vld [vmem:[#allocation6 + $0x38c] sm:$0xf0]  ;;  %v2601_v47 = vor.u32 %v3405_v42, %v2600_v41  ;;  %1323 = vmatpush.bf16.msra.mxu0 %v2345_v45  ;;  %v102_v38 = vld [vmem:[#allocation3] sm:$0xff] }
  0x2a   :  { %v2328_v48 = vld [vmem:[#allocation6 + $0x60] sm:$0xf]  ;;  %v3337_v49 = vld [vmem:[#allocation6 + $0x6c] sm:$0xf0]  ;;  %v2729_v51 = vor.u32 %v3437_v44, %v2728_v43  ;;  %1336 = vmatpush.bf16.msra.mxu1 %v2473_v46  ;;  %v316_v42 = vunpack.c.l.b16 %v102_v38 }
  0x2b   :  { %v2456_v50 = vld [vmem:[#allocation6 + $0x160] sm:$0xf]  ;;  %v3369_v52 = vld [vmem:[#allocation6 + $0x16c] sm:$0xf0]  ;;  %v2329_v57 = vor.u32 %v3337_v49, %v2328_v48  ;;  %1349 = vmatpush.bf16.msra.mxu2 %v2601_v47  ;;  %v3383_v47 = vld [vmem:[#allocation6 + $0x1e4] sm:$0xf] }
  0x2c   :  { %v2584_v53 = vld [vmem:[#allocation6 + $0x260] sm:$0xf]  ;;  %v3401_v54 = vld [vmem:[#allocation6 + $0x26c] sm:$0xf0]  ;;  %v2457_v58 = vor.u32 %v3369_v52, %v2456_v50  ;;  %1362 = vmatpush.bf16.msra.mxu3 %v2729_v51  ;;  %v2522_v48 = vld [vmem:[#allocation6 + $0x1f0] sm:$0xf0]  ;;  %v2397_v50 = vor.u32 %v3351_v35, %v2394_v36 }
  0x2d   :  { %v2712_v55 = vld [vmem:[#allocation6 + $0x360] sm:$0xf]  ;;  %v3433_v56 = vld [vmem:[#allocation6 + $0x36c] sm:$0xf0]  ;;  %v2585_v59 = vor.u32 %v3401_v54, %v2584_v53  ;;  %1324 = vmatpush.bf16.msra.mxu0 %v2329_v57  ;;  %v2378_v57 = vld [vmem:[#allocation6 + $0xd0] sm:$0xf0] }
  0x2e   :  { %v2312_v60 = vld [vmem:[#allocation6 + $0x40] sm:$0xf]  ;;  %v3333_v61 = vld [vmem:[#allocation6 + $0x4c] sm:$0xf0]  ;;  %v2713_v63 = vor.u32 %v3433_v56, %v2712_v55  ;;  %1337 = vmatpush.bf16.msra.mxu1 %v2457_v58  ;;  %v3347_v56 = vld [vmem:[#allocation6 + $0xc4] sm:$0xf]  ;;  %v3822_v58 = vpack.c.b16 %v316_v42, %v316_v42 }
  0x2f   :  { %v2440_v62 = vld [vmem:[#allocation6 + $0x140] sm:$0xf]  ;;  %v3365_v0 = vld [vmem:[#allocation6 + $0x14c] sm:$0xf0]  ;;  %v2313_v5 = vor.u32 %v3333_v61, %v2312_v60  ;;  %1350 = vmatpush.bf16.msra.mxu2 %v2585_v59  ;;  %v317_v59 = vunpack.c.h.b16 %v102_v38  ;;  %v2330_v35 = vld [vmem:[#allocation6 + $0x70] sm:$0xf0] }
  0x30   :  { %v2568_v1 = vld [vmem:[#allocation6 + $0x240] sm:$0xf]  ;;  %v3397_v2 = vld [vmem:[#allocation6 + $0x24c] sm:$0xf0]  ;;  %v2441_v6 = vor.u32 %v3365_v0, %v2440_v62  ;;  %1363 = vmatpush.bf16.msra.mxu3 %v2713_v63  ;;  %v2525_v62 = vor.u32 %v3383_v47, %v2522_v48  ;;  %v3379_v0 = vld [vmem:[#allocation6 + $0x1c4] sm:$0xf] }
  0x31   :  { %v2696_v3 = vld [vmem:[#allocation6 + $0x340] sm:$0xf]  ;;  %v3429_v4 = vld [vmem:[#allocation6 + $0x34c] sm:$0xf0]  ;;  %v2569_v7 = vor.u32 %v3397_v2, %v2568_v1  ;;  %1325 = vmatpush.bf16.msra.mxu0 %v2313_v5  ;;  %v2506_v1 = vld [vmem:[#allocation6 + $0x1d0] sm:$0xf0] }
  0x32   :  { %v2296_v8 = vld [vmem:[#allocation6 + $0x20] sm:$0xf]  ;;  %v3329_v9 = vld [vmem:[#allocation6 + $0x2c] sm:$0xf0]  ;;  %v2697_v11 = vor.u32 %v3429_v4, %v2696_v3  ;;  %1338 = vmatpush.bf16.msra.mxu1 %v2441_v6  ;;  %v2381_v3 = vor.u32 %v3347_v56, %v2378_v57  ;;  %v3331_v47 = vld [vmem:[#allocation6 + $0x44] sm:$0xf] }
  0x33   :  { %v2424_v10 = vld [vmem:[#allocation6 + $0x120] sm:$0xf]  ;;  %v3361_v12 = vld [vmem:[#allocation6 + $0x12c] sm:$0xf0]  ;;  %v2297_v18 = vor.u32 %v3329_v9, %v2296_v8  ;;  %1351 = vmatpush.bf16.msra.mxu2 %v2569_v7  ;;  %v3343_v8 = vld [vmem:[#allocation6 + $0xa4] sm:$0xf] }
  0x34   :  { %v2552_v13 = vld [vmem:[#allocation6 + $0x220] sm:$0xf]  ;;  %v3393_v14 = vld [vmem:[#allocation6 + $0x22c] sm:$0xf0]  ;;  %v2425_v22 = vor.u32 %v3361_v12, %v2424_v10  ;;  %1364 = vmatpush.bf16.msra.mxu3 %v2697_v11  ;;  %v2362_v9 = vld [vmem:[#allocation6 + $0xb0] sm:$0xf0]  ;;  %v3828_v10 = vpack.c.b16 %v317_v59, %v317_v59  ;;  %v2509_v11 = vor.u32 %v3379_v0, %v2506_v1 }
  0x35   :  { %v2680_v15 = vld [vmem:[#allocation6 + $0x320] sm:$0xf]  ;;  %v3425_v16 = vld [vmem:[#allocation6 + $0x32c] sm:$0xf0]  ;;  %v2553_v23 = vor.u32 %v3393_v14, %v2552_v13  ;;  %1326 = vmatpush.bf16.msra.mxu0 %v2297_v18  ;;  %v3375_v13 = vld [vmem:[#allocation6 + $0x1a4] sm:$0xf] }
  0x36   :  { %v2280_v17 = vld [vmem:[#allocation6] sm:$0xf]  ;;  %v3325_v19 = vld [vmem:[#allocation6 + $0xc] sm:$0xf0]  ;;  %v2681_v27 = vor.u32 %v3425_v16, %v2680_v15  ;;  %1339 = vmatpush.bf16.msra.mxu1 %v2425_v22  ;;  %v2490_v14 = vld [vmem:[#allocation6 + $0x1b0] sm:$0xf0]  ;;  %v2365_v16 = vor.u32 %v3343_v8, %v2362_v9 }
  0x37   :  { %v2408_v20 = vld [vmem:[#allocation6 + $0x100] sm:$0xf]  ;;  %v3357_v21 = vld [vmem:[#allocation6 + $0x10c] sm:$0xf0]  ;;  %v2281_v34 = vor.u32 %v3325_v19, %v2280_v17  ;;  %1352 = vmatpush.bf16.msra.mxu2 %v2553_v23  ;;  %v2346_v22 = vld [vmem:[#allocation6 + $0x90] sm:$0xf0] }
  0x38   :  { %v2536_v24 = vld [vmem:[#allocation6 + $0x200] sm:$0xf]  ;;  %v3389_v25 = vld [vmem:[#allocation6 + $0x20c] sm:$0xf0]  ;;  %v2409_v39 = vor.u32 %v3357_v21, %v2408_v20  ;;  %1365 = vmatpush.bf16.msra.mxu3 %v2681_v27  ;;  %v3339_v21 = vld [vmem:[#allocation6 + $0x84] sm:$0xf] }
  0x39   :  { %v103_v26 = vld [vmem:[#allocation3 + $0x8] sm:$0xff]  ;;  %v2664_v28 = vld [vmem:[#allocation6 + $0x300] sm:$0xf]  ;;  %v2537_v40 = vor.u32 %v3389_v25, %v2536_v24  ;;  %1327 = vmatpush.bf16.msra.mxu0 %v2281_v34  ;;  %v105_v23 = vld [vmem:[#allocation3 + $0x18] sm:$0xf]  ;;  %v2493_v24 = vor.u32 %v3375_v13, %v2490_v14 }
  0x3a   :  { %v3421_v29 = vld [vmem:[#allocation6 + $0x30c] sm:$0xf0]  ;;  %v2904_v30 = vld [vmem:[#allocation6 + $0x4e0] sm:$0xf]  ;;  %v318_v37 = vunpack.c.l.b16 %v103_v26  ;;  %v319_v43 = vunpack.c.h.b16 %v103_v26  ;;  %1340 = vmatpush.bf16.msra.mxu1 %v2409_v39  ;;  %v3371_v26 = vld [vmem:[#allocation6 + $0x184] sm:$0xf]  ;;  %v322_v36 = vunpack.c.l.b16 %v105_v23 }
  0x3b   :  { %v3481_v31 = vld [vmem:[#allocation6 + $0x4ec] sm:$0xf0]  ;;  %v3032_v32 = vld [vmem:[#allocation6 + $0x5e0] sm:$0xf]  ;;  %v2665_v44 = vor.u32 %v3421_v29, %v2664_v28  ;;  %1353 = vmatpush.bf16.msra.mxu2 %v2537_v40  ;;  %v2474_v27 = vld [vmem:[#allocation6 + $0x190] sm:$0xf0]  ;;  %v2349_v29 = vor.u32 %v3339_v21, %v2346_v22 }
  0x3c   :  { %v3513_v33 = vld [vmem:[#allocation6 + $0x5ec] sm:$0xf0]  ;;  %v3048_v41 = vld [vmem:[#allocation6 + $0x600] sm:$0xf]  ;;  %v2905_v45 = vor.u32 %v3481_v31, %v2904_v30  ;;  %v3820_v54 = vpack.c.b16 %v318_v37, %v318_v37  ;;  %v3824_v61 = vpack.c.b16 %v319_v43, %v319_v43  ;;  %1328 = vmatmul.bf16.vlgmr.msra.gmra.mxu0 %v3822_v58  ;;  %v3335_v34 = vld [vmem:[#allocation6 + $0x64] sm:$0xf]  ;;  %v2477_v37 = vor.u32 %v3371_v26, %v2474_v27 }
  0x3d   :  { %v3517_v46 = vld [vmem:[#allocation6 + $0x60c] sm:$0xf0]  ;;  %v3033_v49 = vor.u32 %v3513_v33, %v3032_v32  ;;  %v2888_v51 = vld [vmem:[#allocation6 + $0x4c0] sm:$0xf]  ;;  %1366 = vmatpush.bf16.msra.mxu3 %v2665_v44  ;;  %1341 = vmatmul.bf16.vlgmr.msra.gmra.mxu1 %v3828_v10  ;;  %v3367_v39 = vld [vmem:[#allocation6 + $0x164] sm:$0xf]  ;;  %v2333_v42 = vor.u32 %v3335_v34, %v2330_v35 }
  0x3e   :  { %v3477_v52 = vld [vmem:[#allocation6 + $0x4cc] sm:$0xf0]  ;;  %v3016_v53 = vld [vmem:[#allocation6 + $0x5c0] sm:$0xf]  ;;  %v3049_v60 = vor.u32 %v3517_v46, %v3048_v41  ;;  %1372 = vmatpush.bf16.msrb.mxu0 %v2905_v45  ;;  %1354 = vmatmul.bf16.vlgmr.msra.gmra.mxu2 %v3820_v54  ;;  %v2458_v40 = vld [vmem:[#allocation6 + $0x170] sm:$0xf0] }
  0x3f   :  { %v3509_v55 = vld [vmem:[#allocation6 + $0x5cc] sm:$0xf0]  ;;  %v2889_v63 = vor.u32 %v3477_v52, %v2888_v51  ;;  %1385 = vmatpush.bf16.msrb.mxu1 %v3033_v49  ;;  %v2872_v4 = vld [vmem:[#allocation6 + $0x4a0] sm:$0xf]  ;;  %v2314_v48 = vld [vmem:[#allocation6 + $0x50] sm:$0xf0]  ;;  %v3832_v49 = vpack.c.b16 %v322_v36, %v322_v36 }
  0x40   :  { %v3017_v2 = vor.u32 %v3509_v55, %v3016_v53  ;;  %v3473_v5 = vld [vmem:[#allocation6 + $0x4ac] sm:$0xf0]  ;;  %v3000_v6 = vld [vmem:[#allocation6 + $0x5a0] sm:$0xf]  ;;  %1405 = vmatpush.bf16.msrb.mxu2 %v3049_v60  ;;  %1367 = vmatmul.bf16.vlgmr.msra.gmra.mxu3 %v3824_v61  ;;  %v3363_v52 = vld [vmem:[#allocation6 + $0x144] sm:$0xf]  ;;  %v2317_v56 = vor.u32 %v3331_v47, %v2314_v48 }
  0x41   :  { %1411 = vmatpush.bf16.msrb.mxu3 %v2397_v50  ;;  %v3505_v7 = vld [vmem:[#allocation6 + $0x5ac] sm:$0xf0]  ;;  %v2873_v12 = vor.u32 %v3473_v5, %v2872_v4  ;;  %v2856_v17 = vld [vmem:[#allocation6 + $0x480] sm:$0xf]  ;;  %v2461_v50 = vor.u32 %v3367_v39, %v2458_v40  ;;  %v2442_v53 = vld [vmem:[#allocation6 + $0x150] sm:$0xf0] }
  0x42   :  { %1373 = vmatpush.bf16.msrb.mxu0 %v2889_v63  ;;  %v3001_v15 = vor.u32 %v3505_v7, %v3000_v6  ;;  %v3469_v18 = vld [vmem:[#allocation6 + $0x48c] sm:$0xf0]  ;;  %v2984_v19 = vld [vmem:[#allocation6 + $0x580] sm:$0xf]  ;;  %v3327_v63 = vld [vmem:[#allocation6 + $0x24] sm:$0xf] }
  0x43   :  { %1386 = vmatpush.bf16.msrb.mxu1 %v3017_v2  ;;  %v3501_v20 = vld [vmem:[#allocation6 + $0x58c] sm:$0xf0]  ;;  %v2857_v25 = vor.u32 %v3469_v18, %v2856_v17  ;;  %v2840_v30 = vld [vmem:[#allocation6 + $0x460] sm:$0xf]  ;;  %v2298_v0 = vld [vmem:[#allocation6 + $0x30] sm:$0xf0]  ;;  %v2445_v2 = vor.u32 %v3363_v52, %v2442_v53 }
  0x44   :  { %1424 = vmatpush.bf16.msra.mxu2 %v2525_v62  ;;  %v2985_v28 = vor.u32 %v3501_v20, %v2984_v19  ;;  %v3465_v31 = vld [vmem:[#allocation6 + $0x46c] sm:$0xf0]  ;;  %v2968_v32 = vld [vmem:[#allocation6 + $0x560] sm:$0xf]  ;;  %v3359_v1 = vld [vmem:[#allocation6 + $0x124] sm:$0xf]  ;;  %v2301_v8 = vor.u32 %v3327_v63, %v2298_v0 }
  0x45   :  { %1412 = vmatpush.bf16.msrb.mxu3 %v2381_v3  ;;  %v3497_v33 = vld [vmem:[#allocation6 + $0x56c] sm:$0xf0]  ;;  %v2841_v38 = vor.u32 %v3465_v31, %v2840_v30  ;;  %v2824_v43 = vld [vmem:[#allocation6 + $0x440] sm:$0xf]  ;;  %v2426_v4 = vld [vmem:[#allocation6 + $0x130] sm:$0xf0] }
  0x46   :  { %1374 = vmatpush.bf16.msrb.mxu0 %v2873_v12  ;;  %v2969_v41 = vor.u32 %v3497_v33, %v2968_v32  ;;  %v3461_v44 = vld [vmem:[#allocation6 + $0x44c] sm:$0xf0]  ;;  %v2952_v45 = vld [vmem:[#allocation6 + $0x540] sm:$0xf]  ;;  %v104_v6 = vld [vmem:[#allocation3 + $0x10] sm:$0xff]  ;;  %v2429_v20 = vor.u32 %v3359_v1, %v2426_v4 }
  0x47   :  { %1387 = vmatpush.bf16.msrb.mxu1 %v3001_v15  ;;  %v3493_v46 = vld [vmem:[#allocation6 + $0x54c] sm:$0xf0]  ;;  %v2825_v51 = vor.u32 %v3461_v44, %v2824_v43  ;;  %v2808_v57 = vld [vmem:[#allocation6 + $0x420] sm:$0xf]  ;;  %v3323_v13 = vld [vmem:[#allocation6 + $0x4] sm:$0xf]  ;;  %v320_v19 = vunpack.c.l.b16 %v104_v6 }
  0x48   :  { %1425 = vmatpush.bf16.msra.mxu2 %v2509_v11  ;;  %v2953_v55 = vor.u32 %v3493_v46, %v2952_v45  ;;  %v3457_v59 = vld [vmem:[#allocation6 + $0x42c] sm:$0xf0]  ;;  %v2936_v60 = vld [vmem:[#allocation6 + $0x520] sm:$0xf]  ;;  %v2282_v14 = vld [vmem:[#allocation6 + $0x10] sm:$0xf0] }
  0x49   :  { %1413 = vmatpush.bf16.msrb.mxu3 %v2365_v16  ;;  %v3489_v62 = vld [vmem:[#allocation6 + $0x52c] sm:$0xf0]  ;;  %v2809_v3 = vor.u32 %v3457_v59, %v2808_v57  ;;  %v2792_v5 = vld [vmem:[#allocation6 + $0x400] sm:$0xf]  ;;  %v3415_v15 = vld [vmem:[#allocation6 + $0x2e4] sm:$0xf]  ;;  %v2285_v26 = vor.u32 %v3323_v13, %v2282_v14  ;;  %v3836_v35 = vpack.c.b16 %v320_v19, %v320_v19 }
  0x4a   :  { %1375 = vmatpush.bf16.msrb.mxu0 %v2857_v25  ;;  %v2937_v7 = vor.u32 %v3489_v62, %v2936_v60  ;;  %v3453_v9 = vld [vmem:[#allocation6 + $0x40c] sm:$0xf0]  ;;  %v2920_v11 = vld [vmem:[#allocation6 + $0x500] sm:$0xf]  ;;  %v2650_v16 = vld [vmem:[#allocation6 + $0x2f0] sm:$0xf0] }
  0x4b   :  { %1388 = vmatpush.bf16.msrb.mxu1 %v2985_v28  ;;  %v3485_v12 = vld [vmem:[#allocation6 + $0x50c] sm:$0xf0]  ;;  %v3447_v17 = vld [vmem:[#allocation6 + $0x3e4] sm:$0xf]  ;;  %v2778_v18 = vld [vmem:[#allocation6 + $0x3f0] sm:$0xf0]  ;;  %v2793_v21 = vor.u32 %v3453_v9, %v2792_v5 }
  0x4c   :  { %1426 = vmatpush.bf16.msra.mxu2 %v2493_v24  ;;  %v3479_v22 = vld [vmem:[#allocation6 + $0x4e4] sm:$0xf]  ;;  %v2906_v23 = vld [vmem:[#allocation6 + $0x4f0] sm:$0xf0]  ;;  %v321_v24 = vunpack.c.h.b16 %v104_v6  ;;  %v2921_v25 = vor.u32 %v3485_v12, %v2920_v11  ;;  %v2781_v30 = vor.u32 %v3447_v17, %v2778_v18 }
  0x4d   :  { %1414 = vmatpush.bf16.msrb.mxu3 %v2349_v29  ;;  %v3355_v27 = vld [vmem:[#allocation6 + $0x104] sm:$0xf]  ;;  %v2410_v28 = vld [vmem:[#allocation6 + $0x110] sm:$0xf0]  ;;  %v2653_v29 = vor.u32 %v3415_v15, %v2650_v16  ;;  %v2909_v34 = vor.u32 %v3479_v22, %v2906_v23 }
  0x4e   :  { %1376 = vmatpush.bf16.msrb.mxu0 %v2841_v38  ;;  %3062 = vmatmul.msk.bf16.vlgmr.msrb.gmra.mxu2 %vm1316_vm0, %v3832_v49  ;;  %v3511_v31 = vld [vmem:[#allocation6 + $0x5e4] sm:$0xf]  ;;  %v3034_v32 = vld [vmem:[#allocation6 + $0x5f0] sm:$0xf0]  ;;  %v2413_v39 = vor.u32 %v3355_v27, %v2410_v28  ;;  %v3838_v40 = vpack.c.b16 %v321_v24, %v321_v24 }
  0x4f   :  { %1389 = vmatpush.bf16.msrb.mxu1 %v2969_v41  ;;  %v3411_v33 = vld [vmem:[#allocation6 + $0x2c4] sm:$0xf]  ;;  %v2634_v36 = vld [vmem:[#allocation6 + $0x2d0] sm:$0xf0]  ;;  %v3037_v43 = vor.u32 %v3511_v31, %v3034_v32 }
  0x50   :  { %1427 = vmatpush.bf16.msra.mxu2 %v2477_v37  ;;  %v3443_v37 = vld [vmem:[#allocation6 + $0x3c4] sm:$0xf]  ;;  %v2762_v38 = vld [vmem:[#allocation6 + $0x3d0] sm:$0xf0]  ;;  %v2637_v44 = vor.u32 %v3411_v33, %v2634_v36 }
  0x51   :  { %1415 = vmatpush.bf16.msrb.mxu3 %v2333_v42  ;;  %v3475_v41 = vld [vmem:[#allocation6 + $0x4c4] sm:$0xf]  ;;  %v2890_v42 = vld [vmem:[#allocation6 + $0x4d0] sm:$0xf0]  ;;  %v2765_v45 = vor.u32 %v3443_v37, %v2762_v38 }
  0x52   :  { %1377 = vmatpush.bf16.msrb.mxu0 %v2825_v51  ;;  %v3507_v46 = vld [vmem:[#allocation6 + $0x5c4] sm:$0xf]  ;;  %v3018_v47 = vld [vmem:[#allocation6 + $0x5d0] sm:$0xf0] }
  0x53   :  { %1390 = vmatpush.bf16.msrb.mxu1 %v2953_v55  ;;  %v3407_v48 = vld [vmem:[#allocation6 + $0x2a4] sm:$0xf]  ;;  %v2618_v51 = vld [vmem:[#allocation6 + $0x2b0] sm:$0xf0]  ;;  %v3021_v57 = vor.u32 %v3507_v46, %v3018_v47 }
  0x54   :  { %1428 = vmatpush.bf16.msra.mxu2 %v2461_v50  ;;  %v2893_v50 = vor.u32 %v3475_v41, %v2890_v42  ;;  %v3439_v52 = vld [vmem:[#allocation6 + $0x3a4] sm:$0xf]  ;;  %v2746_v53 = vld [vmem:[#allocation6 + $0x3b0] sm:$0xf0]  ;;  %v2621_v59 = vor.u32 %v3407_v48, %v2618_v51 }
  0x55   :  { %1416 = vmatpush.bf16.msrb.mxu3 %v2317_v56  ;;  %v3471_v55 = vld [vmem:[#allocation6 + $0x4a4] sm:$0xf]  ;;  %v2874_v56 = vld [vmem:[#allocation6 + $0x4b0] sm:$0xf0]  ;;  %v2749_v60 = vor.u32 %v3439_v52, %v2746_v53 }
  0x56   :  { %1378 = vmatpush.bf16.msrb.mxu0 %v2809_v3  ;;  %v3503_v62 = vld [vmem:[#allocation6 + $0x5a4] sm:$0xf]  ;;  %v3002_v63 = vld [vmem:[#allocation6 + $0x5b0] sm:$0xf0]  ;;  %v2877_v1 = vor.u32 %v3471_v55, %v2874_v56 }
  0x57   :  { %1391 = vmatpush.bf16.msrb.mxu1 %v2937_v7  ;;  %v3403_v0 = vld [vmem:[#allocation6 + $0x284] sm:$0xf]  ;;  %v2730_v4 = vld [vmem:[#allocation6 + $0x390] sm:$0xf0]  ;;  %v3005_v7 = vor.u32 %v3503_v62, %v3002_v63  ;;  %v2400_v62 = vld [vmem:[#allocation6 + $0xe8] sm:$0xf] }
  0x58   :  { %1429 = vmatpush.bf16.msra.mxu2 %v2445_v2  ;;  %v2602_v2 = vld [vmem:[#allocation6 + $0x290] sm:$0xf0]  ;;  %v3435_v3 = vld [vmem:[#allocation6 + $0x384] sm:$0xf]  ;;  %v3354_v63 = vld [vmem:[#allocation6 + $0xf4] sm:$0xf0] }
  0x59   :  { %1417 = vmatpush.bf16.msrb.mxu3 %v2301_v8  ;;  %v3467_v5 = vld [vmem:[#allocation6 + $0x484] sm:$0xf]  ;;  %v2858_v6 = vld [vmem:[#allocation6 + $0x490] sm:$0xf0]  ;;  %v2605_v8 = vor.u32 %v3403_v0, %v2602_v2  ;;  %v2733_v9 = vor.u32 %v3435_v3, %v2730_v4  ;;  %v2528_v0 = vld [vmem:[#allocation6 + $0x1e8] sm:$0xf] }
  0x5a   :  { %1379 = vmatpush.bf16.msrb.mxu0 %v2793_v21  ;;  %v3499_v11 = vld [vmem:[#allocation6 + $0x584] sm:$0xf]  ;;  %v2986_v12 = vld [vmem:[#allocation6 + $0x590] sm:$0xf0]  ;;  %v2861_v14 = vor.u32 %v3467_v5, %v2858_v6  ;;  %v3386_v2 = vld [vmem:[#allocation6 + $0x1f4] sm:$0xf0] }
  0x5b   :  { %1392 = vmatpush.bf16.msrb.mxu1 %v2921_v25  ;;  %v3399_v13 = vld [vmem:[#allocation6 + $0x264] sm:$0xf]  ;;  %v2586_v15 = vld [vmem:[#allocation6 + $0x270] sm:$0xf0] }
  0x5c   :  { %1430 = vmatpush.bf16.msra.mxu2 %v2429_v20  ;;  %v3431_v16 = vld [vmem:[#allocation6 + $0x364] sm:$0xf]  ;;  %v2714_v17 = vld [vmem:[#allocation6 + $0x370] sm:$0xf0]  ;;  %v2989_v20 = vor.u32 %v3499_v11, %v2986_v12  ;;  %v2589_v21 = vor.u32 %v3399_v13, %v2586_v15  ;;  %v2401_v12 = vor.u32 %v3354_v63, %v2400_v62  ;;  %v3418_v13 = vld [vmem:[#allocation6 + $0x2f4] sm:$0xf0] }
  0x5d   :  { %1418 = vmatpush.bf16.msrb.mxu3 %v2285_v26  ;;  %1380 = vmatmul.bf16.vlgmr.msrb.gmra.mxu0 %v3836_v35  ;;  %v3463_v18 = vld [vmem:[#allocation6 + $0x464] sm:$0xf]  ;;  %v2842_v19 = vld [vmem:[#allocation6 + $0x470] sm:$0xf0]  ;;  %v2717_v22 = vor.u32 %v3431_v16, %v2714_v17  ;;  %v3450_v15 = vld [vmem:[#allocation6 + $0x3f4] sm:$0xf0]  ;;  %v2529_v16 = vor.u32 %v3386_v2, %v2528_v0 }
  0x5e   :  { %1437 = vmatpush.bf16.msra.mxu0 %v2653_v29  ;;  %1393 = vmatmul.bf16.vlgmr.msrb.gmra.mxu1 %v3838_v40  ;;  %v3495_v23 = vld [vmem:[#allocation6 + $0x564] sm:$0xf]  ;;  %v2970_v24 = vld [vmem:[#allocation6 + $0x570] sm:$0xf0]  ;;  %v2845_v26 = vor.u32 %v3463_v18, %v2842_v19  ;;  %v2384_v18 = vld [vmem:[#allocation6 + $0xc8] sm:$0xf] }
  0x5f   :  { %1450 = vmatpush.bf16.msra.mxu1 %v2781_v30  ;;  %v3395_v25 = vld [vmem:[#allocation6 + $0x244] sm:$0xf]  ;;  %v2570_v27 = vld [vmem:[#allocation6 + $0x250] sm:$0xf0]  ;;  %v2973_v32 = vor.u32 %v3495_v23, %v2970_v24  ;;  %v3350_v19 = vld [vmem:[#allocation6 + $0xd4] sm:$0xf0] }
  0x60   :  { %1431 = vmatpush.bf16.msra.mxu2 %v2413_v39  ;;  %1419 = vmatmul.bf16.vlgmr.msrb.gmra.mxu3 %v3822_v58  ;;  %v3427_v28 = vld [vmem:[#allocation6 + $0x344] sm:$0xf]  ;;  %v2698_v29 = vld [vmem:[#allocation6 + $0x350] sm:$0xf0]  ;;  %v2573_v33 = vor.u32 %v3395_v25, %v2570_v27  ;;  %v2640_v25 = vld [vmem:[#allocation6 + $0x2c8] sm:$0xf] }
  0x61   :  { %1463 = vmatpush.bf16.msra.mxu3 %v2909_v34  ;;  %v3459_v30 = vld [vmem:[#allocation6 + $0x444] sm:$0xf]  ;;  %v2826_v31 = vld [vmem:[#allocation6 + $0x450] sm:$0xf0]  ;;  %v2701_v34 = vor.u32 %v3427_v28, %v2698_v29  ;;  %v3414_v27 = vld [vmem:[#allocation6 + $0x2d4] sm:$0xf0] }
  0x62   :  { %1438 = vmatpush.bf16.msra.mxu0 %v2637_v44  ;;  %v3491_v36 = vld [vmem:[#allocation6 + $0x544] sm:$0xf]  ;;  %v2954_v37 = vld [vmem:[#allocation6 + $0x550] sm:$0xf0]  ;;  %v2829_v39 = vor.u32 %v3459_v30, %v2826_v31  ;;  %v2768_v28 = vld [vmem:[#allocation6 + $0x3c8] sm:$0xf] }
  0x63   :  { %1451 = vmatpush.bf16.msra.mxu1 %v2765_v45  ;;  %1432 = vmatmul.bf16.vlgmr.msra.gmra.mxu2 %v3828_v10  ;;  %v3391_v38 = vld [vmem:[#allocation6 + $0x224] sm:$0xf]  ;;  %v2554_v41 = vld [vmem:[#allocation6 + $0x230] sm:$0xf0]  ;;  %v2957_v46 = vor.u32 %v3491_v36, %v2954_v37  ;;  %v3446_v29 = vld [vmem:[#allocation6 + $0x3d4] sm:$0xf0]  ;;  %v2641_v36 = vor.u32 %v3414_v27, %v2640_v25 }
  0x64   :  { %1476 = vmatpush.bf16.msrb.mxu2 %v3037_v43  ;;  %v3423_v42 = vld [vmem:[#allocation6 + $0x324] sm:$0xf]  ;;  %v2682_v43 = vld [vmem:[#allocation6 + $0x330] sm:$0xf0]  ;;  %v2368_v31 = vld [vmem:[#allocation6 + $0xa8] sm:$0xf]  ;;  %v2769_v37 = vor.u32 %v3446_v29, %v2768_v28 }
  0x65   :  { %1464 = vmatpush.bf16.msra.mxu3 %v2893_v50  ;;  %v3455_v44 = vld [vmem:[#allocation6 + $0x424] sm:$0xf]  ;;  %v2810_v45 = vld [vmem:[#allocation6 + $0x430] sm:$0xf0]  ;;  %v2557_v50 = vor.u32 %v3391_v38, %v2554_v41  ;;  %v2685_v51 = vor.u32 %v3423_v42, %v2682_v43  ;;  %v2624_v38 = vld [vmem:[#allocation6 + $0x2a8] sm:$0xf] }
  0x66   :  { %1439 = vmatpush.bf16.msra.mxu0 %v2621_v59  ;;  %v3487_v47 = vld [vmem:[#allocation6 + $0x524] sm:$0xf]  ;;  %v2938_v48 = vld [vmem:[#allocation6 + $0x530] sm:$0xf0]  ;;  %v2813_v56 = vor.u32 %v3455_v44, %v2810_v45  ;;  %v3410_v41 = vld [vmem:[#allocation6 + $0x2b4] sm:$0xf0] }
  0x67   :  { %1452 = vmatpush.bf16.msra.mxu1 %v2749_v60  ;;  %v3387_v52 = vld [vmem:[#allocation6 + $0x204] sm:$0xf]  ;;  %v2538_v53 = vld [vmem:[#allocation6 + $0x210] sm:$0xf0]  ;;  %v2752_v42 = vld [vmem:[#allocation6 + $0x3a8] sm:$0xf] }
  0x68   :  { %1477 = vmatpush.bf16.msrb.mxu2 %v3021_v57  ;;  %v3419_v55 = vld [vmem:[#allocation6 + $0x304] sm:$0xf]  ;;  %v2666_v57 = vld [vmem:[#allocation6 + $0x310] sm:$0xf0]  ;;  %v2541_v5 = vor.u32 %v3387_v52, %v2538_v53  ;;  %v3442_v43 = vld [vmem:[#allocation6 + $0x3b4] sm:$0xf0] }
  0x69   :  { %1465 = vmatpush.bf16.msra.mxu3 %v2877_v1  ;;  %v3451_v59 = vld [vmem:[#allocation6 + $0x404] sm:$0xf]  ;;  %v2794_v60 = vld [vmem:[#allocation6 + $0x410] sm:$0xf0]  ;;  %v2941_v1 = vor.u32 %v3487_v47, %v2938_v48  ;;  %v2669_v6 = vor.u32 %v3419_v55, %v2666_v57  ;;  %v2352_v45 = vld [vmem:[#allocation6 + $0x88] sm:$0xf] }
  0x6a   :  { %1440 = vmatpush.bf16.msra.mxu0 %v2605_v8  ;;  %v3515_v3 = vld [vmem:[#allocation6 + $0x604] sm:$0xf]  ;;  %v3050_v4 = vld [vmem:[#allocation6 + $0x610] sm:$0xf0]  ;;  %v2797_v11 = vor.u32 %v3451_v59, %v2794_v60  ;;  %v2480_v47 = vld [vmem:[#allocation6 + $0x188] sm:$0xf] }
  0x6b   :  { %1453 = vmatpush.bf16.msra.mxu1 %v2733_v9  ;;  %v2922_v8 = vld [vmem:[#allocation6 + $0x510] sm:$0xf0]  ;;  %v2656_v9 = vld [vmem:[#allocation6 + $0x2e8] sm:$0xf]  ;;  %v3053_v17 = vor.u32 %v3515_v3, %v3050_v4  ;;  %v3374_v48 = vld [vmem:[#allocation6 + $0x194] sm:$0xf0] }
  0x6c   :  { %1478 = vmatpush.bf16.msrb.mxu2 %v3005_v7  ;;  %v3483_v7 = vld [vmem:[#allocation6 + $0x504] sm:$0xf]  ;;  %v2657_v23 = vor.u32 %v3418_v13, %v2656_v9  ;;  %v2608_v52 = vld [vmem:[#allocation6 + $0x288] sm:$0xf]  ;;  %v3406_v55 = vld [vmem:[#allocation6 + $0x294] sm:$0xf0]  ;;  %v2481_v59 = vor.u32 %v3374_v48, %v2480_v47 }
  0x6d   :  { %1466 = vmatpush.bf16.msra.mxu3 %v2861_v14  ;;  %v2784_v14 = vld [vmem:[#allocation6 + $0x3e8] sm:$0xf]  ;;  %v3438_v57 = vld [vmem:[#allocation6 + $0x394] sm:$0xf0] }
  0x6e   :  { %1441 = vmatpush.bf16.msra.mxu0 %v2589_v21  ;;  %v2512_v21 = vld [vmem:[#allocation6 + $0x1c8] sm:$0xf]  ;;  %v2785_v24 = vor.u32 %v3450_v15, %v2784_v14  ;;  %v3338_v62 = vld [vmem:[#allocation6 + $0x74] sm:$0xf0] }
  0x6f   :  { %1454 = vmatpush.bf16.msra.mxu1 %v2717_v22  ;;  %v3382_v22 = vld [vmem:[#allocation6 + $0x1d4] sm:$0xf0]  ;;  %v2336_v60 = vld [vmem:[#allocation6 + $0x68] sm:$0xf] }
  0x70   :  { %1479 = vmatpush.bf16.msrb.mxu2 %v2989_v20  ;;  %v2925_v20 = vor.u32 %v3483_v7, %v2922_v8  ;;  %v2513_v30 = vor.u32 %v3382_v22, %v2512_v21  ;;  %v2464_v63 = vld [vmem:[#allocation6 + $0x168] sm:$0xf]  ;;  %v3370_v0 = vld [vmem:[#allocation6 + $0x174] sm:$0xf0]  ;;  %v2337_v4 = vor.u32 %v3338_v62, %v2336_v60 }
  0x71   :  { %1467 = vmatpush.bf16.msra.mxu3 %v2845_v26  ;;  %v2385_v26 = vor.u32 %v3350_v19, %v2384_v18  ;;  %v2592_v3 = vld [vmem:[#allocation6 + $0x268] sm:$0xf]  ;;  %v3434_v7 = vld [vmem:[#allocation6 + $0x374] sm:$0xf0]  ;;  %v2465_v8 = vor.u32 %v3370_v0, %v2464_v63 }
  0x72   :  { %1442 = vmatpush.bf16.msra.mxu0 %v2573_v33  ;;  %v2496_v33 = vld [vmem:[#allocation6 + $0x1a8] sm:$0xf]  ;;  %v3366_v13 = vld [vmem:[#allocation6 + $0x154] sm:$0xf0] }
  0x73   :  { %1455 = vmatpush.bf16.msra.mxu1 %v2701_v34  ;;  %v3378_v34 = vld [vmem:[#allocation6 + $0x1b4] sm:$0xf0]  ;;  %v2320_v9 = vld [vmem:[#allocation6 + $0x48] sm:$0xf] }
  0x74   :  { %1480 = vmatpush.bf16.msrb.mxu2 %v2973_v32  ;;  %v3346_v32 = vld [vmem:[#allocation6 + $0xb4] sm:$0xf0]  ;;  %v2497_v44 = vor.u32 %v3378_v34, %v2496_v33  ;;  %v2704_v19 = vld [vmem:[#allocation6 + $0x348] sm:$0xf] }
  0x75   :  { %1468 = vmatpush.bf16.msra.mxu3 %v2829_v39  ;;  %v2369_v39 = vor.u32 %v3346_v32, %v2368_v31  ;;  %v3398_v18 = vld [vmem:[#allocation6 + $0x254] sm:$0xf0]  ;;  %v2304_v22 = vld [vmem:[#allocation6 + $0x28] sm:$0xf] }
  0x76   :  { %1443 = vmatpush.bf16.msra.mxu0 %v2557_v50  ;;  %v2625_v50 = vor.u32 %v3410_v41, %v2624_v38  ;;  %v3362_v25 = vld [vmem:[#allocation6 + $0x134] sm:$0xf0]  ;;  %v2560_v28 = vld [vmem:[#allocation6 + $0x228] sm:$0xf] }
  0x77   :  { %1456 = vmatpush.bf16.msra.mxu1 %v2685_v51  ;;  %v2753_v51 = vor.u32 %v3442_v43, %v2752_v42  ;;  %v3394_v29 = vld [vmem:[#allocation6 + $0x234] sm:$0xf0]  ;;  %v2688_v31 = vld [vmem:[#allocation6 + $0x328] sm:$0xf] }
  0x78   :  { %1481 = vmatpush.bf16.msrb.mxu2 %v2957_v46  ;;  %v3342_v46 = vld [vmem:[#allocation6 + $0x94] sm:$0xf0]  ;;  %v2288_v33 = vld [vmem:[#allocation6 + $0x8] sm:$0xf]  ;;  %v2561_v43 = vor.u32 %v3394_v29, %v2560_v28 }
  0x79   :  { %1469 = vmatpush.bf16.msra.mxu3 %v2813_v56  ;;  %v2353_v53 = vor.u32 %v3342_v46, %v2352_v45  ;;  %v2736_v56 = vld [vmem:[#allocation6 + $0x388] sm:$0xf]  ;;  %v3426_v32 = vld [vmem:[#allocation6 + $0x334] sm:$0xf0] }
  0x7a   :  { %1444 = vmatpush.bf16.msra.mxu0 %v2541_v5  ;;  %v2737_v2 = vor.u32 %v3438_v57, %v2736_v56  ;;  %v3402_v5 = vld [vmem:[#allocation6 + $0x274] sm:$0xf0]  ;;  %v3040_v42 = vld [vmem:[#allocation6 + $0x5e8] sm:$0xf]  ;;  %v2402_v56 = vld [vmem:[#allocation6 + $0xf8] sm:$0xf0] }
  0x7b   :  { %1457 = vmatpush.bf16.msra.mxu1 %v2669_v6  ;;  %v2720_v6 = vld [vmem:[#allocation6 + $0x368] sm:$0xf]  ;;  %v2593_v14 = vor.u32 %v3402_v5, %v2592_v3  ;;  %v3358_v38 = vld [vmem:[#allocation6 + $0x114] sm:$0xf0] }
  0x7c   :  { %1482 = vmatpush.bf16.msrb.mxu2 %v2941_v1  ;;  %v2609_v1 = vor.u32 %v3406_v55, %v2608_v52  ;;  %v2721_v15 = vor.u32 %v3434_v7, %v2720_v6  ;;  %v3482_v41 = vld [vmem:[#allocation6 + $0x4f4] sm:$0xf0]  ;;  %v2544_v46 = vld [vmem:[#allocation6 + $0x208] sm:$0xf]  ;;  %v3352_v52 = vld [vmem:[#allocation6 + $0xec] sm:$0xf] }
  0x7d   :  { %1470 = vmatpush.bf16.msra.mxu3 %v2797_v11  ;;  %1445 = vmatmul.bf16.vlgmr.msra.gmra.mxu0 %v3820_v54  ;;  %v3334_v11 = vld [vmem:[#allocation6 + $0x54] sm:$0xf0]  ;;  %v3056_v57 = vld [vmem:[#allocation6 + $0x608] sm:$0xf]  ;;  %v3384_v6 = vld [vmem:[#allocation6 + $0x1ec] sm:$0xf] }
  0x7e   :  { %1496 = vmatpush.bf16.msrb.mxu0 %v3053_v17  ;;  %1458 = vmatmul.bf16.vlgmr.msra.gmra.mxu1 %v3824_v61  ;;  %v2321_v17 = vor.u32 %v3334_v11, %v2320_v9  ;;  %v3514_v45 = vld [vmem:[#allocation6 + $0x5f4] sm:$0xf0]  ;;  %v2896_v62 = vld [vmem:[#allocation6 + $0x4c8] sm:$0xf]  ;;  %v2530_v7 = vld [vmem:[#allocation6 + $0x1f8] sm:$0xf0] }
  0x7f   :  { %1502 = vmatpush.bf16.msrb.mxu1 %v2401_v12  ;;  %v2448_v12 = vld [vmem:[#allocation6 + $0x148] sm:$0xf]  ;;  %v3390_v47 = vld [vmem:[#allocation6 + $0x214] sm:$0xf0]  ;;  %v3041_v60 = vor.u32 %v3514_v45, %v3040_v42  ;;  %v3348_v9 = vld [vmem:[#allocation6 + $0xcc] sm:$0xf] }
  0x80   :  { %1483 = vmatpush.bf16.msrb.mxu2 %v2925_v20  ;;  %1471 = vmatmul.bf16.vlgmr.msra.gmra.mxu3 %v3836_v35  ;;  %v3430_v20 = vld [vmem:[#allocation6 + $0x354] sm:$0xf0]  ;;  %v2449_v21 = vor.u32 %v3366_v13, %v2448_v12  ;;  %v2545_v0 = vor.u32 %v3390_v47, %v2544_v46  ;;  %v2386_v11 = vld [vmem:[#allocation6 + $0xd8] sm:$0xf0]  ;;  %v2880_v13 = vld [vmem:[#allocation6 + $0x4a8] sm:$0xf] }
  0x81   :  { %1515 = vmatpush.bf16.msrb.mxu3 %v2529_v16  ;;  %v2576_v16 = vld [vmem:[#allocation6 + $0x248] sm:$0xf]  ;;  %v2705_v27 = vor.u32 %v3430_v20, %v2704_v19  ;;  %v3478_v63 = vld [vmem:[#allocation6 + $0x4d4] sm:$0xf0]  ;;  %v3380_v19 = vld [vmem:[#allocation6 + $0x1cc] sm:$0xf] }
  0x82   :  { %1528 = vmatpush.bf16.msra.mxu0 %v2657_v23  ;;  %v3330_v23 = vld [vmem:[#allocation6 + $0x34] sm:$0xf0]  ;;  %v2514_v20 = vld [vmem:[#allocation6 + $0x1d8] sm:$0xf0]  ;;  %v2992_v28 = vld [vmem:[#allocation6 + $0x588] sm:$0xf] }
  0x83   :  { %1503 = vmatpush.bf16.msrb.mxu1 %v2385_v26  ;;  %1484 = vmatmul.bf16.vlgmr.msrb.gmra.mxu2 %v3838_v40  ;;  %v2577_v26 = vor.u32 %v3398_v18, %v2576_v16  ;;  %v3510_v3 = vld [vmem:[#allocation6 + $0x5d4] sm:$0xf0]  ;;  %v3008_v16 = vld [vmem:[#allocation6 + $0x5a8] sm:$0xf]  ;;  %v2389_v18 = vor.u32 %v3348_v9, %v2386_v11  ;;  %v3372_v45 = vld [vmem:[#allocation6 + $0x18c] sm:$0xf] }
  0x84   :  { %1541 = vmatpush.bf16.msra.mxu2 %v2785_v24  ;;  %v2432_v24 = vld [vmem:[#allocation6 + $0x128] sm:$0xf]  ;;  %v3502_v29 = vld [vmem:[#allocation6 + $0x594] sm:$0xf0]  ;;  %v2482_v46 = vld [vmem:[#allocation6 + $0x198] sm:$0xf0] }
  0x85   :  { %1516 = vmatpush.bf16.msrb.mxu3 %v2513_v30  ;;  %v2305_v30 = vor.u32 %v3330_v23, %v2304_v22  ;;  %v2433_v34 = vor.u32 %v3362_v25, %v2432_v24  ;;  %v3344_v22 = vld [vmem:[#allocation6 + $0xac] sm:$0xf]  ;;  %v2370_v23 = vld [vmem:[#allocation6 + $0xb8] sm:$0xf0]  ;;  %v2864_v25 = vld [vmem:[#allocation6 + $0x488] sm:$0xf] }
  0x86   :  { %1529 = vmatpush.bf16.msra.mxu0 %v2641_v36  ;;  %v3326_v36 = vld [vmem:[#allocation6 + $0x14] sm:$0xf0]  ;;  %v2976_v42 = vld [vmem:[#allocation6 + $0x568] sm:$0xf]  ;;  %v3364_v9 = vld [vmem:[#allocation6 + $0x14c] sm:$0xf] }
  0x87   :  { %1504 = vmatpush.bf16.msrb.mxu1 %v2369_v39  ;;  %v2912_v39 = vld [vmem:[#allocation6 + $0x4e8] sm:$0xf]  ;;  %v2289_v48 = vor.u32 %v3326_v36, %v2288_v33  ;;  %v2354_v36 = vld [vmem:[#allocation6 + $0x98] sm:$0xf0] }
  0x88   :  { %1542 = vmatpush.bf16.msra.mxu2 %v2769_v37  ;;  %v2416_v37 = vld [vmem:[#allocation6 + $0x108] sm:$0xf]  ;;  %v2913_v55 = vor.u32 %v3482_v41, %v2912_v39  ;;  %v3466_v39 = vld [vmem:[#allocation6 + $0x474] sm:$0xf0]  ;;  %v2450_v11 = vld [vmem:[#allocation6 + $0x158] sm:$0xf0] }
  0x89   :  { %1517 = vmatpush.bf16.msrb.mxu3 %v2497_v44  ;;  %v2689_v44 = vor.u32 %v3426_v32, %v2688_v31  ;;  %v3376_v31 = vld [vmem:[#allocation6 + $0x1ac] sm:$0xf]  ;;  %v2498_v32 = vld [vmem:[#allocation6 + $0x1b8] sm:$0xf0] }
  0x8a   :  { %1530 = vmatpush.bf16.msra.mxu0 %v2625_v50  ;;  %v2672_v50 = vld [vmem:[#allocation6 + $0x308] sm:$0xf]  ;;  %v2501_v41 = vor.u32 %v3376_v31, %v2498_v32 }
  0x8b   :  { %1505 = vmatpush.bf16.msrb.mxu1 %v2353_v53  ;;  %v2417_v53 = vor.u32 %v3358_v38, %v2416_v37  ;;  %v2993_v37 = vor.u32 %v3502_v29, %v2992_v28  ;;  %v2848_v38 = vld [vmem:[#allocation6 + $0x468] sm:$0xf]  ;;  %v3324_v29 = vld [vmem:[#allocation6 + $0xc] sm:$0xf] }
  0x8c   :  { %1543 = vmatpush.bf16.msra.mxu2 %v2753_v51  ;;  %v3422_v51 = vld [vmem:[#allocation6 + $0x314] sm:$0xf0]  ;;  %v2849_v47 = vor.u32 %v3466_v39, %v2848_v38  ;;  %v3412_v38 = vld [vmem:[#allocation6 + $0x2cc] sm:$0xf]  ;;  %v2642_v39 = vld [vmem:[#allocation6 + $0x2d8] sm:$0xf0] }
  0x8d   :  { %1518 = vmatpush.bf16.msrb.mxu3 %v2481_v59  ;;  %3063 = vmatmul.msk.bf16.vlgmr.msrb.gmra.mxu0 %vm1316_vm0, %v3832_v49  ;;  %v3518_v59 = vld [vmem:[#allocation6 + $0x614] sm:$0xf0] }
  0x8e   :  { %1531 = vmatpush.bf16.msra.mxu0 %v2609_v1  ;;  %v2673_v1 = vor.u32 %v3422_v51, %v2672_v50  ;;  %v3057_v5 = vor.u32 %v3518_v59, %v3056_v57  ;;  %v2338_v50 = vld [vmem:[#allocation6 + $0x78] sm:$0xf0]  ;;  %v3494_v57 = vld [vmem:[#allocation6 + $0x554] sm:$0xf0] }
  0x8f   :  { %1506 = vmatpush.bf16.msrb.mxu1 %v2337_v4  ;;  %v2405_v4 = vor.u32 %v3352_v52, %v2402_v56  ;;  %v2832_v52 = vld [vmem:[#allocation6 + $0x448] sm:$0xf] }
  0x90   :  { %1544 = vmatpush.bf16.msra.mxu2 %v2737_v2  ;;  %v3024_v2 = vld [vmem:[#allocation6 + $0x5c8] sm:$0xf] }
  0x91   :  { %1519 = vmatpush.bf16.msrb.mxu3 %v2465_v8  ;;  %v2897_v8 = vor.u32 %v3478_v63, %v2896_v62  ;;  %v3025_v12 = vor.u32 %v3510_v3, %v3024_v2  ;;  %v2960_v56 = vld [vmem:[#allocation6 + $0x548] sm:$0xf]  ;;  %v2466_v62 = vld [vmem:[#allocation6 + $0x178] sm:$0xf0] }
  0x92   :  { %1532 = vmatpush.bf16.msra.mxu0 %v2593_v14  ;;  %v3474_v14 = vld [vmem:[#allocation6 + $0x4b4] sm:$0xf0]  ;;  %v2961_v2 = vor.u32 %v3494_v57, %v2960_v56  ;;  %v2816_v3 = vld [vmem:[#allocation6 + $0x428] sm:$0xf]  ;;  %v3408_v56 = vld [vmem:[#allocation6 + $0x2ac] sm:$0xf] }
  0x93   :  { %1507 = vmatpush.bf16.msrb.mxu1 %v2321_v17  ;;  %v3506_v17 = vld [vmem:[#allocation6 + $0x5b4] sm:$0xf0]  ;;  %v2626_v57 = vld [vmem:[#allocation6 + $0x2b8] sm:$0xf0] }
  0x94   :  { %1545 = vmatpush.bf16.msra.mxu2 %v2721_v15  ;;  %v2533_v15 = vor.u32 %v3384_v6, %v2530_v7  ;;  %v3009_v24 = vor.u32 %v3506_v17, %v3008_v16  ;;  %v2944_v6 = vld [vmem:[#allocation6 + $0x528] sm:$0xf]  ;;  %v3490_v7 = vld [vmem:[#allocation6 + $0x534] sm:$0xf0] }
  0x95   :  { %1520 = vmatpush.bf16.msrb.mxu3 %v2449_v21  ;;  %v2881_v21 = vor.u32 %v3474_v14, %v2880_v13  ;;  %v3328_v13 = vld [vmem:[#allocation6 + $0x2c] sm:$0xf]  ;;  %v2306_v14 = vld [vmem:[#allocation6 + $0x38] sm:$0xf0]  ;;  %v2945_v16 = vor.u32 %v3490_v7, %v2944_v6  ;;  %v3454_v17 = vld [vmem:[#allocation6 + $0x414] sm:$0xf0] }
  0x96   :  { %1533 = vmatpush.bf16.msra.mxu0 %v2577_v26  ;;  %v3470_v26 = vld [vmem:[#allocation6 + $0x494] sm:$0xf0]  ;;  %v3404_v6 = vld [vmem:[#allocation6 + $0x28c] sm:$0xf]  ;;  %v2610_v7 = vld [vmem:[#allocation6 + $0x298] sm:$0xf0] }
  0x97   :  { %1508 = vmatpush.bf16.msrb.mxu1 %v2305_v30  ;;  %v2373_v30 = vor.u32 %v3344_v22, %v2370_v23  ;;  %v2865_v33 = vor.u32 %v3470_v26, %v2864_v25  ;;  %v2658_v22 = vld [vmem:[#allocation6 + $0x2f8] sm:$0xf0]  ;;  %v3448_v23 = vld [vmem:[#allocation6 + $0x3ec] sm:$0xf] }
  0x98   :  { %1546 = vmatpush.bf16.msra.mxu2 %v2705_v27  ;;  %v2517_v27 = vor.u32 %v3380_v19, %v2514_v20  ;;  %v3486_v19 = vld [vmem:[#allocation6 + $0x514] sm:$0xf0]  ;;  %v2453_v20 = vor.u32 %v3364_v9, %v2450_v11  ;;  %v2786_v25 = vld [vmem:[#allocation6 + $0x3f8] sm:$0xf0]  ;;  %v3360_v26 = vld [vmem:[#allocation6 + $0x12c] sm:$0xf] }
  0x99   :  { %1521 = vmatpush.bf16.msrb.mxu3 %v2433_v34  ;;  %v3340_v34 = vld [vmem:[#allocation6 + $0x8c] sm:$0xf]  ;;  %v2738_v11 = vld [vmem:[#allocation6 + $0x398] sm:$0xf0] }
  0x9a   :  { %1534 = vmatpush.bf16.msra.mxu0 %v2561_v43  ;;  %v3498_v43 = vld [vmem:[#allocation6 + $0x574] sm:$0xf0]  ;;  %v3436_v9 = vld [vmem:[#allocation6 + $0x38c] sm:$0xf] }
  0x9b   :  { %1509 = vmatpush.bf16.msrb.mxu1 %v2289_v48  ;;  %v3336_v48 = vld [vmem:[#allocation6 + $0x6c] sm:$0xf]  ;;  %v2977_v51 = vor.u32 %v3498_v43, %v2976_v42  ;;  %v2770_v43 = vld [vmem:[#allocation6 + $0x3d8] sm:$0xf0] }
  0x9c   :  { %1547 = vmatpush.bf16.msra.mxu2 %v2689_v44  ;;  %v2357_v44 = vor.u32 %v3340_v34, %v2354_v36  ;;  %v2341_v59 = vor.u32 %v3336_v48, %v2338_v50  ;;  %v2914_v34 = vld [vmem:[#allocation6 + $0x4f8] sm:$0xf0]  ;;  %v2789_v36 = vor.u32 %v3448_v23, %v2786_v25  ;;  %v2645_v50 = vor.u32 %v3412_v38, %v2642_v39  ;;  %v3500_v25 = vld [vmem:[#allocation6 + $0x58c] sm:$0xf] }
  0x9d   :  { %1522 = vmatpush.bf16.msrb.mxu3 %v2417_v53  ;;  %v3462_v53 = vld [vmem:[#allocation6 + $0x454] sm:$0xf0]  ;;  %v3042_v48 = vld [vmem:[#allocation6 + $0x5f8] sm:$0xf0]  ;;  %v3496_v38 = vld [vmem:[#allocation6 + $0x56c] sm:$0xf] }
  0x9e   :  { %1535 = vmatpush.bf16.msra.mxu0 %v2545_v0  ;;  %1510 = vmatmul.bf16.vlgmr.msrb.gmra.mxu1 %v3822_v58  ;;  %v2833_v63 = vor.u32 %v3462_v53, %v2832_v52  ;;  %v3332_v0 = vld [vmem:[#allocation6 + $0x4c] sm:$0xf]  ;;  %v2898_v52 = vld [vmem:[#allocation6 + $0x4d8] sm:$0xf0] }
  0x9f   :  { %1554 = vmatpush.bf16.msra.mxu1 %v2913_v55  ;;  %v2485_v55 = vor.u32 %v3372_v45, %v2482_v46  ;;  %v2418_v45 = vld [vmem:[#allocation6 + $0x118] sm:$0xf0] }
  0xa0   :  { %1548 = vmatpush.bf16.msra.mxu2 %v2673_v1  ;;  %1523 = vmatmul.bf16.vlgmr.msrb.gmra.mxu3 %v3828_v10  ;;  %v2322_v1 = vld [vmem:[#allocation6 + $0x58] sm:$0xf0] }
  0xa1   :  { %1567 = vmatpush.bf16.msra.mxu3 %v3041_v60  ;;  %1536 = vmatmul.bf16.vlgmr.msra.gmra.mxu0 %v3820_v54  ;;  %v3368_v60 = vld [vmem:[#allocation6 + $0x16c] sm:$0xf]  ;;  %v2722_v23 = vld [vmem:[#allocation6 + $0x378] sm:$0xf0] }
  0xa2   :  { %1587 = vmatpush.bf16.msrb.mxu0 %v3057_v5  ;;  %v2469_v5 = vor.u32 %v3368_v60, %v2466_v62  ;;  %v3440_v60 = vld [vmem:[#allocation6 + $0x3ac] sm:$0xf]  ;;  %v2754_v62 = vld [vmem:[#allocation6 + $0x3b8] sm:$0xf0] }
  0xa3   :  { %1555 = vmatpush.bf16.msra.mxu1 %v2897_v8  ;;  %1549 = vmatmul.bf16.vlgmr.msra.gmra.mxu2 %v3824_v61  ;;  %v2325_v8 = vor.u32 %v3332_v0, %v2322_v1  ;;  %v3508_v0 = vld [vmem:[#allocation6 + $0x5cc] sm:$0xf]  ;;  %v3026_v1 = vld [vmem:[#allocation6 + $0x5d8] sm:$0xf0] }
  0xa4   :  { %1593 = vmatpush.bf16.msrb.mxu2 %v2405_v4  ;;  %v3458_v4 = vld [vmem:[#allocation6 + $0x434] sm:$0xf0]  ;;  %v2978_v39 = vld [vmem:[#allocation6 + $0x578] sm:$0xf0] }
  0xa5   :  { %1568 = vmatpush.bf16.msra.mxu3 %v3025_v12  ;;  %v2817_v12 = vor.u32 %v3458_v4, %v2816_v3  ;;  %v3472_v3 = vld [vmem:[#allocation6 + $0x4ac] sm:$0xf]  ;;  %v2882_v4 = vld [vmem:[#allocation6 + $0x4b8] sm:$0xf0] }
  0xa6   :  { %1606 = vmatpush.bf16.msra.mxu0 %v2533_v15  ;;  %v2800_v15 = vld [vmem:[#allocation6 + $0x408] sm:$0xf] }
  0xa7   :  { %1556 = vmatpush.bf16.msra.mxu1 %v2881_v21  ;;  %v3416_v21 = vld [vmem:[#allocation6 + $0x2ec] sm:$0xf]  ;;  %v2801_v28 = vor.u32 %v3454_v17, %v2800_v15  ;;  %v2613_v15 = vor.u32 %v3404_v6, %v2610_v7  ;;  %v2866_v17 = vld [vmem:[#allocation6 + $0x498] sm:$0xf0]  ;;  %v3124_v7 = vld [vmem:[#allocation9 + $0x70] sm:$0xf] }
  0xa8   :  { %1594 = vmatpush.bf16.msrb.mxu2 %v2389_v18  ;;  %v2928_v18 = vld [vmem:[#allocation6 + $0x508] sm:$0xf]  ;;  %v2661_v32 = vor.u32 %v3416_v21, %v2658_v22  ;;  %v3432_v22 = vld [vmem:[#allocation6 + $0x36c] sm:$0xf] }
  0xa9   :  { %1569 = vmatpush.bf16.msra.mxu3 %v3009_v24  ;;  %v2309_v24 = vor.u32 %v3328_v13, %v2306_v14  ;;  %v2929_v31 = vor.u32 %v3486_v19, %v2928_v18  ;;  %v3504_v13 = vld [vmem:[#allocation6 + $0x5ac] sm:$0xf]  ;;  %v3010_v14 = vld [vmem:[#allocation6 + $0x5b8] sm:$0xf0]  ;;  %v2741_v18 = vor.u32 %v3436_v9, %v2738_v11 }
  0xaa   :  { %1607 = vmatpush.bf16.msra.mxu0 %v2517_v27  ;;  %v2434_v27 = vld [vmem:[#allocation6 + $0x138] sm:$0xf0]  ;;  %v3400_v19 = vld [vmem:[#allocation6 + $0x26c] sm:$0xf]  ;;  %v3013_v21 = vor.u32 %v3504_v13, %v3010_v14 }
  0xab   :  { %1557 = vmatpush.bf16.msra.mxu1 %v2865_v33  ;;  %v3480_v33 = vld [vmem:[#allocation6 + $0x4ec] sm:$0xf]  ;;  %v3058_v11 = vld [vmem:[#allocation6 + $0x618] sm:$0xf0] }
  0xac   :  { %1595 = vmatpush.bf16.msrb.mxu2 %v2373_v30  ;;  %v2290_v30 = vld [vmem:[#allocation6 + $0x18] sm:$0xf0]  ;;  %v2917_v46 = vor.u32 %v3480_v33, %v2914_v34  ;;  %v3428_v34 = vld [vmem:[#allocation6 + $0x34c] sm:$0xf] }
  0xad   :  { %1570 = vmatpush.bf16.msra.mxu3 %v2993_v37  ;;  %v2437_v37 = vor.u32 %v3360_v26, %v2434_v27  ;;  %v2293_v42 = vor.u32 %v3324_v29, %v2290_v30  ;;  %v2994_v26 = vld [vmem:[#allocation6 + $0x598] sm:$0xf0]  ;;  %v3396_v30 = vld [vmem:[#allocation6 + $0x24c] sm:$0xf] }
  0xae   :  { %1608 = vmatpush.bf16.msra.mxu0 %v2501_v41  ;;  %v3444_v41 = vld [vmem:[#allocation6 + $0x3cc] sm:$0xf]  ;;  %v2850_v29 = vld [vmem:[#allocation6 + $0x478] sm:$0xf0] }
  0xaf   :  { %1558 = vmatpush.bf16.msra.mxu1 %v2849_v47  ;;  %v3512_v47 = vld [vmem:[#allocation6 + $0x5ec] sm:$0xf]  ;;  %v2773_v53 = vor.u32 %v3444_v41, %v2770_v43  ;;  %v3864_v41 = vld [vmem:[#allocation8] sm:$0xf]  ;;  %v3534_v13 = vld [vmem:[#allocation9 + $0x74] sm:$0xf0] }
  0xb0   :  { %1596 = vmatpush.bf16.msrb.mxu2 %v2357_v44  ;;  %v3356_v44 = vld [vmem:[#allocation6 + $0x10c] sm:$0xf] }
  0xb1   :  { %1571 = vmatpush.bf16.msra.mxu3 %v2977_v51  ;;  %3064 = vmatmul.msk.bf16.vlgmr.msrb.gmra.mxu0 %vm1316_vm0, %v3832_v49  ;;  %v3476_v51 = vld [vmem:[#allocation6 + $0x4cc] sm:$0xf] }
  0xb2   :  { %1609 = vmatpush.bf16.msra.mxu0 %v2485_v55  ;;  %v2421_v55 = vor.u32 %v3356_v44, %v2418_v45  ;;  %v3460_v44 = vld [vmem:[#allocation6 + $0x44c] sm:$0xf]  ;;  %v2834_v45 = vld [vmem:[#allocation6 + $0x458] sm:$0xf0] }
  0xb3   :  { %1559 = vmatpush.bf16.msra.mxu1 %v2833_v63  ;;  %v2901_v63 = vor.u32 %v3476_v51, %v2898_v52  ;;  %v2981_v51 = vor.u32 %v3496_v38, %v2978_v39  ;;  %v3424_v52 = vld [vmem:[#allocation6 + $0x32c] sm:$0xf]  ;;  %v3108_v39 = vld [vmem:[#allocation9 + $0x50] sm:$0xf] }
  0xb4   :  { %1597 = vmatpush.bf16.msrb.mxu2 %v2341_v59  ;;  %v3045_v59 = vor.u32 %v3512_v47, %v3042_v48  ;;  %v3392_v48 = vld [vmem:[#allocation6 + $0x22c] sm:$0xf] }
  0xb5   :  { %1572 = vmatpush.bf16.msra.mxu3 %v2961_v2  ;;  %v2629_v2 = vor.u32 %v3408_v56, %v2626_v57  ;;  %v304_v56 = vperm.slane %v3864_v41, 0  ;;  %v2837_v57 = vor.u32 %v3460_v44, %v2834_v45  ;;  %v3516_v9 = vld [vmem:[#allocation6 + $0x60c] sm:$0xf] }
  0xb6   :  { %1610 = vmatpush.bf16.msra.mxu0 %v2469_v5  ;;  %v2757_v5 = vor.u32 %v3440_v60, %v2754_v62  ;;  %v2962_v60 = vld [vmem:[#allocation6 + $0x558] sm:$0xf0]  ;;  %v3488_v14 = vld [vmem:[#allocation6 + $0x52c] sm:$0xf] }
  0xb7   :  { %1560 = vmatpush.bf16.msra.mxu1 %v2817_v12  ;;  %v2885_v12 = vor.u32 %v3472_v3, %v2882_v4  ;;  %v2546_v3 = vld [vmem:[#allocation6 + $0x218] sm:$0xf0]  ;;  %v3420_v4 = vld [vmem:[#allocation6 + $0x30c] sm:$0xf] }
  0xb8   :  { %1598 = vmatpush.bf16.msrb.mxu2 %v2325_v8  ;;  %v3029_v8 = vor.u32 %v3508_v0, %v3026_v1  ;;  %v2818_v0 = vld [vmem:[#allocation6 + $0x438] sm:$0xf0]  ;;  %v3388_v1 = vld [vmem:[#allocation6 + $0x20c] sm:$0xf] }
  0xb9   :  { %1573 = vmatpush.bf16.msra.mxu3 %v2945_v16  ;;  %v3468_v16 = vld [vmem:[#allocation6 + $0x48c] sm:$0xf] }
  0xba   :  { %1611 = vmatpush.bf16.msra.mxu0 %v2453_v20  ;;  %v2594_v20 = vld [vmem:[#allocation6 + $0x278] sm:$0xf0]  ;;  %v3862_v33 = vpop.f32.mrf.mxu1 }
  0xbb   :  { %1561 = vmatpush.bf16.msra.mxu1 %v2801_v28  ;;  %v2597_v27 = vor.u32 %v3400_v19, %v2594_v20  ;;  %v3464_v28 = vld [vmem:[#allocation6 + $0x46c] sm:$0xf]  ;;  %v2802_v19 = vld [vmem:[#allocation6 + $0x418] sm:$0xf0] }
  0xbc   :  { %1599 = vmatpush.bf16.msrb.mxu2 %v2309_v24  ;;  %v3860_v24 = vpop.f32.mrf.mxu0 }
  0xbd   :  { %1574 = vmatpush.bf16.msra.mxu3 %v2929_v31  ;;  %v2578_v31 = vld [vmem:[#allocation6 + $0x258] sm:$0xf0] }
  0xbe   :  { %1612 = vmatpush.bf16.msra.mxu0 %v2437_v37  ;;  %1562 = vmatmul.bf16.vlgmr.msra.gmra.mxu1 %v3836_v35  ;;  %v2853_v37 = vor.u32 %v3464_v28, %v2850_v29  ;;  %v2581_v43 = vor.u32 %v3396_v30, %v2578_v31  ;;  %v3116_v29 = vld [vmem:[#allocation9 + $0x60] sm:$0xf]  ;;  %v3484_v30 = vld [vmem:[#allocation6 + $0x50c] sm:$0xf]  ;;  %v2930_v31 = vld [vmem:[#allocation6 + $0x518] sm:$0xf0] }
  0xbf   :  { %1619 = vmatpush.bf16.msrb.mxu1 %v2661_v32  ;;  %v2997_v32 = vor.u32 %v3500_v25, %v2994_v26  ;;  %v1330_v25 = vadd.f32 %v3860_v24, %v304_v56  ;;  %v3125_v26 = vor.u32 %v3534_v13, %v3124_v7  ;;  %v2933_v38 = vor.u32 %v3484_v30, %v2930_v31 }
  0xc0   :  { %1600 = vmatpush.bf16.msrb.mxu2 %v2293_v42  ;;  %1575 = vmatmul.bf16.vlgmr.msra.gmra.mxu3 %v3838_v40 }
  0xc1   :  { %1632 = vmatpush.bf16.msrb.mxu3 %v2789_v36  ;;  %v2706_v36 = vld [vmem:[#allocation6 + $0x358] sm:$0xf0]  ;;  %v3866_v42 = vpop.f32.mrf.mxu2 }
  0xc2   :  { %1613 = vmatpush.bf16.msra.mxu0 %v2421_v55 }
  0xc3   :  { %1620 = vmatpush.bf16.msrb.mxu1 %v2645_v50  ;;  %1601 = vmatmul.bf16.vlgmr.msrb.gmra.mxu2 %v3822_v58  ;;  %v2869_v58 = vor.u32 %v3468_v16, %v2866_v17  ;;  %v3868_v47 = vpop.f32.mrf.mxu3  ;;  %v2562_v50 = vld [vmem:[#allocation6 + $0x238] sm:$0xf0]  ;;  %v2549_v17 = vor.u32 %v3388_v1, %v2546_v3 }
  0xc4   :  { %1645 = vmatpush.bf16.msra.mxu2 %v2917_v46  ;;  %v2709_v46 = vor.u32 %v3428_v34, %v2706_v36  ;;  %v1331_v55 = vpop.f32.mrf.mxu0  ;;  %v2565_v62 = vor.u32 %v3392_v48, %v2562_v50  ;;  %v3180_v34 = vld [vmem:[#allocation9 + $0xe0] sm:$0xf]  ;;  %v3548_v36 = vld [vmem:[#allocation9 + $0xe4] sm:$0xf0]  ;;  %v3546_v48 = vld [vmem:[#allocation9 + $0xd4] sm:$0xf0] }
  0xc5   :  { %1633 = vmatpush.bf16.msrb.mxu3 %v2773_v53  ;;  %1614 = vmatmul.bf16.vlgmr.msra.gmra.mxu0 %v3828_v10  ;;  %v2725_v10 = vor.u32 %v3432_v22, %v2722_v23  ;;  %v2690_v53 = vld [vmem:[#allocation6 + $0x338] sm:$0xf0]  ;;  %v3188_v23 = vld [vmem:[#allocation9 + $0xf0] sm:$0xf]  ;;  %v3181_v45 = vor.u32 %v3548_v36, %v3180_v34  ;;  %v3544_v55 = vld [vmem:[#allocation9 + $0xc4] sm:$0xf0] }
  0xc6   :  { %1658 = vmatpush.bf16.msrb.mxu0 %v3045_v59  ;;  %v3492_v59 = vld [vmem:[#allocation6 + $0x54c] sm:$0xf]  ;;  %v3542_v1 = vld [vmem:[#allocation9 + $0xb4] sm:$0xf0]  ;;  %v3118_v34 = vld [vmem:[#allocation9 + $0x68] sm:$0xf0] }
  0xc7   :  { %1621 = vmatpush.bf16.msrb.mxu1 %v2629_v2  ;;  %v2693_v2 = vor.u32 %v3424_v52, %v2690_v53  ;;  %v2965_v6 = vor.u32 %v3492_v59, %v2962_v60  ;;  %v3164_v53 = vld [vmem:[#allocation9 + $0xc0] sm:$0xf]  ;;  %v3092_v59 = vld [vmem:[#allocation9 + $0x30] sm:$0xf] }
  0xc8   :  { %1646 = vmatpush.bf16.msra.mxu2 %v2901_v63  ;;  %v3456_v63 = vld [vmem:[#allocation6 + $0x42c] sm:$0xf] }
  0xc9   :  { %1634 = vmatpush.bf16.msrb.mxu3 %v2757_v5  ;;  %v2674_v5 = vld [vmem:[#allocation6 + $0x318] sm:$0xf0]  ;;  %v1357_v16 = vpop.f32.mrf.mxu2 }
  0xca   :  { %1659 = vmatpush.bf16.msrb.mxu0 %v3029_v8  ;;  %v1344_v8 = vpop.f32.mrf.mxu1  ;;  %v2677_v20 = vor.u32 %v3420_v4, %v2674_v5  ;;  %v3084_v4 = vld [vmem:[#allocation9 + $0x20] sm:$0xf]  ;;  %v3524_v5 = vld [vmem:[#allocation9 + $0x24] sm:$0xf0] }
  0xcb   :  { %1622 = vmatpush.bf16.msrb.mxu1 %v2613_v15  ;;  %v2946_v15 = vld [vmem:[#allocation6 + $0x538] sm:$0xf0]  ;;  %v1370_v22 = vpop.f32.mrf.mxu3  ;;  %v3085_v7 = vor.u32 %v3524_v5, %v3084_v4  ;;  %v3541_v5 = vld [vmem:[#allocation9 + $0xb4] sm:$0xf] }
  0xcc   :  { %1647 = vmatpush.bf16.msra.mxu2 %v2885_v12  ;;  %v2821_v12 = vor.u32 %v3456_v63, %v2818_v0  ;;  %v3165_v63 = vor.u32 %v3544_v55, %v3164_v53  ;;  %v3156_v0 = vld [vmem:[#allocation9 + $0xb0] sm:$0xf]  ;;  %v3520_v22 = vld [vmem:[#allocation9 + $0x4] sm:$0xf0]  ;;  %v3566_v55 = vld [vmem:[#allocation9 + $0x174] sm:$0xf0] }
  0xcd   :  { %1635 = vmatpush.bf16.msrb.mxu3 %v2741_v18  ;;  %v3452_v18 = vld [vmem:[#allocation6 + $0x40c] sm:$0xf] }
  0xce   :  { %1660 = vmatpush.bf16.msrb.mxu0 %v3013_v21  ;;  %v3061_v21 = vor.u32 %v3516_v9, %v3058_v11  ;;  %v2805_v28 = vor.u32 %v3452_v18, %v2802_v19  ;;  %v3076_v9 = vld [vmem:[#allocation9 + $0x10] sm:$0xf]  ;;  %v3522_v11 = vld [vmem:[#allocation9 + $0x14] sm:$0xf0] }
  0xcf   :  { %1623 = vmatpush.bf16.msrb.mxu1 %v2597_v27  ;;  %v2949_v27 = vor.u32 %v3488_v14, %v2946_v15  ;;  %v3538_v18 = vld [vmem:[#allocation9 + $0x94] sm:$0xf0]  ;;  %v3077_v19 = vor.u32 %v3522_v11, %v3076_v9  ;;  %v3086_v9 = vld [vmem:[#allocation9 + $0x28] sm:$0xf0] }
  0xd0   :  { %1648 = vmatpush.bf16.msra.mxu2 %v2869_v58  ;;  %v3550_v58 = vld [vmem:[#allocation9 + $0xf4] sm:$0xf0] }
  0xd1   :  { %1636 = vmatpush.bf16.msrb.mxu3 %v2725_v10  ;;  %v3532_v10 = vld [vmem:[#allocation9 + $0x64] sm:$0xf0]  ;;  %v1407_v44 = vpop.f32.mrf.mxu2 }
  0xd2   :  { %1661 = vmatpush.bf16.msrb.mxu0 %v2997_v32  ;;  %v3189_v32 = vor.u32 %v3550_v58, %v3188_v23  ;;  %v3117_v24 = vor.u32 %v3532_v10, %v3116_v29  ;;  %v3533_v23 = vld [vmem:[#allocation9 + $0x74] sm:$0xf]  ;;  %v3126_v58 = vld [vmem:[#allocation9 + $0x78] sm:$0xf0] }
  0xd3   :  { %1624 = vmatpush.bf16.msrb.mxu1 %v2581_v43  ;;  %v3530_v43 = vld [vmem:[#allocation9 + $0x54] sm:$0xf0]  ;;  %v3190_v29 = vld [vmem:[#allocation9 + $0xf8] sm:$0xf0]  ;;  %v3129_v30 = vor.u32 %v3533_v23, %v3126_v58 }
  0xd4   :  { %1649 = vmatpush.bf16.msra.mxu2 %v2853_v37  ;;  %v1343_v37 = vadd.f32 %v3862_v33, %v1330_v25  ;;  %v3109_v33 = vor.u32 %v3530_v43, %v3108_v39  ;;  %v3547_v39 = vld [vmem:[#allocation9 + $0xe4] sm:$0xf]  ;;  %v3182_v43 = vld [vmem:[#allocation9 + $0xe8] sm:$0xf0] }
  0xd5   :  { %1637 = vmatpush.bf16.msrb.mxu3 %v2709_v46  ;;  %v3172_v46 = vld [vmem:[#allocation9 + $0xd0] sm:$0xf] }
  0xd6   :  { %1662 = vmatpush.bf16.msrb.mxu0 %v2981_v51  ;;  %v1356_v50 = vadd.f32 %v3866_v42, %v1343_v37  ;;  %v3100_v51 = vld [vmem:[#allocation9 + $0x40] sm:$0xf]  ;;  %v3173_v52 = vor.u32 %v3546_v48, %v3172_v46  ;;  %v3526_v42 = vld [vmem:[#allocation9 + $0x34] sm:$0xf0]  ;;  %v3529_v46 = vld [vmem:[#allocation9 + $0x54] sm:$0xf] }
  0xd7   :  { %1625 = vmatpush.bf16.msrb.mxu1 %v2565_v62  ;;  %v3110_v48 = vld [vmem:[#allocation9 + $0x58] sm:$0xf0] }
  0xd8   :  { %1650 = vmatpush.bf16.msra.mxu2 %v2837_v57  ;;  %v3113_v53 = vor.u32 %v3529_v46, %v3110_v48  ;;  %v3212_v46 = vld [vmem:[#allocation9 + $0x120] sm:$0xf]  ;;  %v3556_v48 = vld [vmem:[#allocation9 + $0x124] sm:$0xf0] }
  0xd9   :  { %1638 = vmatpush.bf16.msrb.mxu3 %v2693_v2  ;;  %v3093_v2 = vor.u32 %v3526_v42, %v3092_v59 }
  0xda   :  { %1663 = vmatpush.bf16.msrb.mxu0 %v2965_v6  ;;  %v1381_v57 = vpop.f32.mrf.mxu0  ;;  %v3540_v6 = vld [vmem:[#allocation9 + $0xa4] sm:$0xf0] }
  0xdb   :  { %1626 = vmatpush.bf16.msrb.mxu1 %v2549_v17  ;;  %v1394_v62 = vpop.f32.mrf.mxu1  ;;  %v3140_v17 = vld [vmem:[#allocation9 + $0x90] sm:$0xf] }
  0xdc   :  { %1651 = vmatpush.bf16.msra.mxu2 %v2821_v12  ;;  %v3141_v25 = vor.u32 %v3538_v18, %v3140_v17  ;;  %v3562_v17 = vld [vmem:[#allocation9 + $0x154] sm:$0xf0] }
  0xdd   :  { %1639 = vmatpush.bf16.msrb.mxu3 %v2677_v20 }
  0xde   :  { %1664 = vmatpush.bf16.msrb.mxu0 %v2949_v27  ;;  %1627 = vmatmul.bf16.vlgmr.msrb.gmra.mxu1 %v3820_v54  ;;  %v3528_v54 = vld [vmem:[#allocation9 + $0x44] sm:$0xf0] }
  0xdf   :  { %1678 = vmatpush.bf16.msra.mxu1 %v3061_v21  ;;  %v3101_v56 = vor.u32 %v3528_v54, %v3100_v51  ;;  %v3068_v21 = vld [vmem:[#allocation9] sm:$0xf]  ;;  %v3545_v51 = vld [vmem:[#allocation9 + $0xd4] sm:$0xf]  ;;  %v3174_v54 = vld [vmem:[#allocation9 + $0xd8] sm:$0xf0] }
  0xe0   :  { %1652 = vmatpush.bf16.msra.mxu2 %v2805_v28  ;;  %1640 = vmatmul.bf16.vlgmr.msrb.gmra.mxu3 %v3824_v61  ;;  %v1369_v61 = vadd.f32 %v3868_v47, %v1356_v50  ;;  %v3157_v47 = vor.u32 %v3542_v1, %v3156_v0  ;;  %v3069_v27 = vor.u32 %v3520_v22, %v3068_v21  ;;  %v3549_v28 = vld [vmem:[#allocation9 + $0xf4] sm:$0xf]  ;;  %v3094_v0 = vld [vmem:[#allocation9 + $0x38] sm:$0xf0] }
  0xe1   :  { %2086 = vmatpush.bf16.msra.mxu3 %v3125_v26  ;;  %v3536_v26 = vld [vmem:[#allocation9 + $0x84] sm:$0xf0]  ;;  %v3185_v50 = vor.u32 %v3547_v39, %v3182_v43  ;;  %v3177_v59 = vor.u32 %v3545_v51, %v3174_v54  ;;  %v3078_v21 = vld [vmem:[#allocation9 + $0x18] sm:$0xf0] }
  0xe2   :  { %1665 = vmatpush.bf16.msrb.mxu0 %v2933_v38  ;;  %v1382_v60 = vadd.f32 %v1381_v57, %v1369_v61  ;;  %v1383_v12 = vpop.f32.mrf.mxu0  ;;  %v305_v38 = vperm.slane %v3864_v41, 1  ;;  %v3527_v61 = vld [vmem:[#allocation9 + $0x44] sm:$0xf] }
  0xe3   :  { %2099 = vmatpush.bf16.msrb.mxu1 %v3189_v32  ;;  %1653 = vmatmul.bf16.vlgmr.msra.gmra.mxu2 %v3836_v35  ;;  %v1409_v35 = vpop.f32.mrf.mxu2  ;;  %v1420_v13 = vpop.f32.mrf.mxu3  ;;  %v3531_v32 = vld [vmem:[#allocation9 + $0x64] sm:$0xf] }
  0xe4   :  { %v1395_v3 = vadd.f32 %v1394_v62, %v1382_v60  ;;  %v1396_v14 = vpop.f32.mrf.mxu1  ;;  %v3543_v60 = vld [vmem:[#allocation9 + $0xc4] sm:$0xf]  ;;  %v3166_v62 = vld [vmem:[#allocation9 + $0xc8] sm:$0xf0] }
  0xe5   :  { %2087 = vmatpush.bf16.msra.mxu3 %v3117_v24  ;;  %1666 = vmatmul.bf16.vlgmr.msrb.gmra.mxu0 %v3838_v40  ;;  %v3148_v40 = vld [vmem:[#allocation9 + $0xa0] sm:$0xf]  ;;  %v3193_v24 = vor.u32 %v3549_v28, %v3190_v29  ;;  %v3560_v29 = vld [vmem:[#allocation9 + $0x144] sm:$0xf0] }
  0xe6   :  { %v1408_v8 = vadd.f32 %v1407_v44, %v1395_v3  ;;  %v3149_v15 = vor.u32 %v3540_v6, %v3148_v40  ;;  %v3244_v3 = vld [vmem:[#allocation9 + $0x160] sm:$0xf]  ;;  %v3564_v40 = vld [vmem:[#allocation9 + $0x164] sm:$0xf0] }
  0xe7   :  { %2100 = vmatpush.bf16.msrb.mxu1 %v3181_v45  ;;  %v3121_v45 = vor.u32 %v3531_v32, %v3118_v34  ;;  %v3228_v28 = vld [vmem:[#allocation9 + $0x140] sm:$0xf]  ;;  %v3558_v32 = vld [vmem:[#allocation9 + $0x134] sm:$0xf0]  ;;  %v3519_v34 = vld [vmem:[#allocation9 + $0x4] sm:$0xf] }
  0xe8   :  { %v1684_v20 = vmul.f32 0.01, %v1408_v8 }
  0xe9   :  { %2088 = vmatpush.bf16.msra.mxu3 %v3109_v33  ;;  %v1421_v33 = vadd.f32 %v1420_v13, %v305_v38  ;;  %v3539_v13 = vld [vmem:[#allocation9 + $0xa4] sm:$0xf] }
  0xea   :  { %v1688_v10 = vmax.f32 %v1408_v8, %v1684_v20  ;;  %v3523_v8 = vld [vmem:[#allocation9 + $0x24] sm:$0xf]  ;;  %v3521_v20 = vld [vmem:[#allocation9 + $0x14] sm:$0xf] }
  0xeb   :  { %2101 = vmatpush.bf16.msrb.mxu1 %v3173_v52  ;;  %v1433_v16 = vpop.f32.mrf.mxu2  ;;  %v1422_v31 = vpop.f32.mrf.mxu3  ;;  %v3252_v52 = vld [vmem:[#allocation9 + $0x170] sm:$0xf]  ;;  %v3089_v18 = vor.u32 %v3523_v8, %v3086_v9  ;;  %v3535_v38 = vld [vmem:[#allocation9 + $0x84] sm:$0xf]  ;;  %v3561_v8 = vld [vmem:[#allocation9 + $0x154] sm:$0xf] }
  0xec   :  { %v3882_v44 = vpack.c.bf16 %v1688_v10, %v1688_v10  ;;  %v3253_v57 = vor.u32 %v3566_v55, %v3252_v52  ;;  %v1434_v42 = vadd.f32 %v1433_v16, %v1421_v33  ;;  %v3236_v16 = vld [vmem:[#allocation9 + $0x150] sm:$0xf]  ;;  %v3081_v10 = vor.u32 %v3521_v20, %v3078_v21 }
  0xed   :  { %2089 = vmatpush.bf16.msra.mxu3 %v3101_v56  ;;  %v3102_v56 = vld [vmem:[#allocation9 + $0x48] sm:$0xf0]  ;;  %v3220_v31 = vld [vmem:[#allocation9 + $0x130] sm:$0xf]  ;;  %v3213_v52 = vor.u32 %v3556_v48, %v3212_v46 }
  0xee   :  { %3065 = vmatmul.msk.bf16.vlgmr.msra.gmra.mxu1 %vm1316_vm0, %v3832_v49  ;;  %v3132_v49 = vld [vmem:[#allocation9 + $0x80] sm:$0xf]  ;;  %2112 = vmatpush.bf16.msrb.mxu2 %v3253_v57  ;;  %v3105_v35 = vor.u32 %v3527_v61, %v3102_v56  ;;  %v3221_v39 = vor.u32 %v3558_v32, %v3220_v31  ;;  %v3204_v61 = vld [vmem:[#allocation9 + $0x110] sm:$0xf]  ;;  %v3554_v56 = vld [vmem:[#allocation9 + $0x114] sm:$0xf0] }
  0xef   :  { %2102 = vmatpush.bf16.msrb.mxu1 %v3165_v63  ;;  %v3133_v36 = vor.u32 %v3536_v26, %v3132_v49  ;;  %v3525_v63 = vld [vmem:[#allocation9 + $0x34] sm:$0xf]  ;;  %v3214_v32 = vld [vmem:[#allocation9 + $0x128] sm:$0xf0] }
  0xf0   :  { %v3097_v6 = vor.u32 %v3525_v63, %v3094_v0  ;;  %v3552_v63 = vld [vmem:[#allocation9 + $0x104] sm:$0xf0] }
  0xf1   :  { %2090 = vmatpush.bf16.msra.mxu3 %v3093_v2  ;;  %v3169_v2 = vor.u32 %v3543_v60, %v3166_v62 }
  0xf3   :  { %2103 = vmatpush.bf16.msrb.mxu1 %v3157_v47  ;;  %v1435_v37 = vpop.f32.mrf.mxu2  ;;  %v3158_v47 = vld [vmem:[#allocation9 + $0xb8] sm:$0xf0] }
  0xf4   :  { %v3161_v12 = vor.u32 %v3541_v5, %v3158_v47  ;;  %v3246_v5 = vld [vmem:[#allocation9 + $0x168] sm:$0xf0] }
  0xf5   :  { %2091 = vmatpush.bf16.msra.mxu3 %v3085_v7  ;;  %v3245_v7 = vor.u32 %v3564_v40, %v3244_v3 }
  0xf7   :  { %2104 = vmatpush.bf16.msrb.mxu1 %v3149_v15  ;;  %2113 = vmatpush.bf16.msrb.mxu2 %v3245_v7  ;;  %v3150_v15 = vld [vmem:[#allocation9 + $0xa8] sm:$0xf0]  ;;  %v3316_v7 = vld [vmem:[#allocation9 + $0x1f0] sm:$0xf] }
  0xf8   :  { %v3153_v58 = vor.u32 %v3539_v13, %v3150_v15  ;;  %v3580_v15 = vld [vmem:[#allocation9 + $0x1e4] sm:$0xf0] }
  0xf9   :  { %2092 = vmatpush.bf16.msra.mxu3 %v3077_v19  ;;  %v3237_v19 = vor.u32 %v3562_v17, %v3236_v16  ;;  %v3559_v16 = vld [vmem:[#allocation9 + $0x144] sm:$0xf] }
  0xfa   :  { %v1446_v1 = vpop.f32.mrf.mxu0 }
  0xfb   :  { %2105 = vmatpush.bf16.msrb.mxu1 %v3141_v25  ;;  %v1447_v4 = vadd.f32 %v1446_v1, %v1434_v42  ;;  %v1459_v11 = vpop.f32.mrf.mxu1  ;;  %v3537_v25 = vld [vmem:[#allocation9 + $0x94] sm:$0xf]  ;;  %2114 = vmatpush.bf16.msrb.mxu2 %v3237_v19 }
  0xfc   :  { %v3565_v1 = vld [vmem:[#allocation9 + $0x174] sm:$0xf] }
  0xfd   :  { %2093 = vmatpush.bf16.msra.mxu3 %v3069_v27  ;;  %v1460_v14 = vadd.f32 %v1459_v11, %v1447_v4  ;;  %v3142_v27 = vld [vmem:[#allocation9 + $0x98] sm:$0xf0]  ;;  %v3563_v4 = vld [vmem:[#allocation9 + $0x164] sm:$0xf] }
  0xfe   :  { %v3249_v47 = vor.u32 %v3563_v4, %v3246_v5  ;;  %v3238_v11 = vld [vmem:[#allocation9 + $0x158] sm:$0xf0] }
  0xff   :  { %2106 = vmatpush.bf16.msrb.mxu1 %v3133_v36  ;;  %v3070_v36 = vld [vmem:[#allocation9 + $0x8] sm:$0xf0] }
 0x100   :  { %2094 = vmatmul.bf16.vlgmr.msra.gmra.mxu3 %v3882_v44 }
 0x101   :  { %2138 = vmatpush.bf16.msrb.mxu3 %v3129_v30  ;;  %v3229_v30 = vor.u32 %v3560_v29, %v3228_v28  ;;  %v3292_v28 = vld [vmem:[#allocation9 + $0x1c0] sm:$0xf]  ;;  %v3576_v29 = vld [vmem:[#allocation9 + $0x1c4] sm:$0xf0] }
 0x102   :  { %v1448_v22 = vpop.f32.mrf.mxu0  ;;  %v3293_v31 = vor.u32 %v3576_v29, %v3292_v28  ;;  %v3278_v28 = vld [vmem:[#allocation9 + $0x1a8] sm:$0xf0]  ;;  %v307_v29 = vperm.slane %v3864_v41, 3 }
 0x103   :  { %2151 = vmatpush.bf16.msra.mxu1 %v3193_v24  ;;  %v1472_v23 = vpop.f32.mrf.mxu3  ;;  %v1461_v37 = vpop.f32.mrf.mxu1  ;;  %v3145_v24 = vor.u32 %v3537_v25, %v3142_v27  ;;  %2115 = vmatpush.bf16.msrb.mxu2 %v3229_v30 }
 0x104   :  { %v1473_v49 = vadd.f32 %v1472_v23, %v1460_v14  ;;  %v3308_v14 = vld [vmem:[#allocation9 + $0x1e0] sm:$0xf]  ;;  %v3300_v23 = vld [vmem:[#allocation9 + $0x1d0] sm:$0xf] }
 0x105   :  { %2139 = vmatpush.bf16.msrb.mxu3 %v3121_v45  ;;  %v3134_v45 = vld [vmem:[#allocation9 + $0x88] sm:$0xf0]  ;;  %v3309_v17 = vor.u32 %v3580_v15, %v3308_v14  ;;  %v3284_v37 = vld [vmem:[#allocation9 + $0x1b0] sm:$0xf]  ;;  %v3577_v14 = vld [vmem:[#allocation9 + $0x1d4] sm:$0xf] }
 0x106   :  { %v1485_v26 = vpop.f32.mrf.mxu2  ;;  %v3137_v54 = vor.u32 %v3535_v38, %v3134_v45  ;;  %v3553_v38 = vld [vmem:[#allocation9 + $0x114] sm:$0xf]  ;;  %v3302_v15 = vld [vmem:[#allocation9 + $0x1d8] sm:$0xf0] }
 0x107   :  { %2152 = vmatpush.bf16.msra.mxu1 %v3185_v50  ;;  %v1486_v43 = vadd.f32 %v1485_v26, %v1473_v49  ;;  %v3073_v50 = vor.u32 %v3519_v34, %v3070_v36  ;;  %2116 = vmatpush.bf16.msrb.mxu2 %v3221_v39  ;;  %v3557_v49 = vld [vmem:[#allocation9 + $0x134] sm:$0xf]  ;;  %v3222_v26 = vld [vmem:[#allocation9 + $0x138] sm:$0xf0]  ;;  %v306_v34 = vperm.slane %v3864_v41, 2 }
 0x108   :  { %v3225_v27 = vor.u32 %v3557_v49, %v3222_v26  ;;  %v3206_v39 = vld [vmem:[#allocation9 + $0x118] sm:$0xf0] }
 0x109   :  { %2140 = vmatpush.bf16.msrb.mxu3 %v3113_v53  ;;  %v3286_v49 = vld [vmem:[#allocation9 + $0x1b8] sm:$0xf0] }
 0x10a   :  { %v1498_v33 = vpop.f32.mrf.mxu0 }
 0x10b   :  { %2153 = vmatpush.bf16.msra.mxu1 %v3177_v59  ;;  %v1474_v51 = vpop.f32.mrf.mxu3  ;;  %v1499_v53 = vadd.f32 %v1498_v33, %v1486_v43  ;;  %2117 = vmatpush.bf16.msrb.mxu2 %v3213_v52  ;;  %v3205_v59 = vor.u32 %v3554_v56, %v3204_v61  ;;  %v3551_v52 = vld [vmem:[#allocation9 + $0x104] sm:$0xf] }
 0x10c   :  { %v3276_v51 = vld [vmem:[#allocation9 + $0x1a0] sm:$0xf] }
 0x10d   :  { %2141 = vmatpush.bf16.msrb.mxu3 %v3105_v35  ;;  %v1685_v57 = vmul.f32 0.01, %v1499_v53  ;;  %v3196_v35 = vld [vmem:[#allocation9 + $0x100] sm:$0xf] }
 0x10e   :  { %v1487_v55 = vpop.f32.mrf.mxu2  ;;  %v3197_v0 = vor.u32 %v3552_v63, %v3196_v35  ;;  %v3260_v63 = vld [vmem:[#allocation9 + $0x180] sm:$0xf] }
 0x10f   :  { %2154 = vmatpush.bf16.msra.mxu1 %v3169_v2  ;;  %v1689_v42 = vmax.f32 %v1499_v53, %v1685_v57  ;;  %2118 = vmatpush.bf16.msrb.mxu2 %v3205_v59  ;;  %v3254_v2 = vld [vmem:[#allocation9 + $0x178] sm:$0xf0]  ;;  %v3198_v55 = vld [vmem:[#allocation9 + $0x108] sm:$0xf0] }
 0x110   :  { %v3257_v3 = vor.u32 %v3565_v1, %v3254_v2  ;;  %v3201_v56 = vor.u32 %v3551_v52, %v3198_v55  ;;  %v3581_v2 = vld [vmem:[#allocation9 + $0x1f4] sm:$0xf] }
 0x111   :  { %2142 = vmatpush.bf16.msrb.mxu3 %v3097_v6  ;;  %v1693_v60 = vpack.c.bf16 %v1689_v42, %v1689_v42  ;;  %v3268_v42 = vld [vmem:[#allocation9 + $0x190] sm:$0xf] }
 0x112   :  { %v1500_v62 = vpop.f32.mrf.mxu0 }
 0x113   :  { %2155 = vmatpush.bf16.msra.mxu1 %v3161_v12  ;;  %2119 = vmatpush.bf16.msrb.mxu2 %v3197_v0  ;;  %v3241_v12 = vor.u32 %v3561_v8, %v3238_v11  ;;  %v3568_v0 = vld [vmem:[#allocation9 + $0x184] sm:$0xf0]  ;;  %v3310_v8 = vld [vmem:[#allocation9 + $0x1e8] sm:$0xf0] }
 0x114   :  { %2107 = vmatmul.bf16.vlgmr.msrb.gmra.mxu1 %v1693_v60  ;;  %v3261_v1 = vor.u32 %v3568_v0, %v3260_v63 }
 0x115   :  { %2143 = vmatpush.bf16.msrb.mxu3 %v3089_v18  ;;  %v3230_v18 = vld [vmem:[#allocation9 + $0x148] sm:$0xf0] }
 0x116   :  { %v3233_v20 = vor.u32 %v3559_v16, %v3230_v18  ;;  %v3305_v18 = vor.u32 %v3577_v14, %v3302_v15  ;;  %v2230_v15 = vld [vmem:[#allocation2] sm:$0x1] }
 0x117   :  { %2156 = vmatpush.bf16.msra.mxu1 %v3153_v58  ;;  %2164 = vmatpush.bf16.msra.mxu2 %v3257_v3  ;;  %v3578_v58 = vld [vmem:[#allocation9 + $0x1d4] sm:$0xf0]  ;;  %v3318_v3 = vld [vmem:[#allocation9 + $0x1f8] sm:$0xf0] }
 0x118   :  { %v3301_v25 = vor.u32 %v3578_v58, %v3300_v23 }
 0x119   :  { %2144 = vmatpush.bf16.msrb.mxu3 %v3081_v10  ;;  %v3555_v10 = vld [vmem:[#allocation9 + $0x124] sm:$0xf] }
 0x11a   :  { %v3217_v36 = vor.u32 %v3555_v10, %v3214_v32 }
 0x11b   :  { %2157 = vmatpush.bf16.msra.mxu1 %v3145_v24  ;;  %v1511_v6 = vpop.f32.mrf.mxu1  ;;  %2165 = vmatpush.bf16.msra.mxu2 %v3249_v47  ;;  %v3574_v24 = vld [vmem:[#allocation9 + $0x1b4] sm:$0xf0]  ;;  %v3321_v47 = vor.u32 %v3581_v2, %v3318_v3 }
 0x11c   :  { %v3285_v46 = vor.u32 %v3574_v24, %v3284_v37  ;;  %v1512_v48 = vadd.f32 %v1511_v6, %v306_v34  ;;  %v3567_v24 = vld [vmem:[#allocation9 + $0x184] sm:$0xf] }
 0x11d   :  { %2145 = vmatpush.bf16.msrb.mxu3 %v3073_v50  ;;  %v3209_v50 = vor.u32 %v3553_v38, %v3206_v39  ;;  %v3262_v38 = vld [vmem:[#allocation9 + $0x188] sm:$0xf0] }
 0x11e   :  { %v1537_v40 = vpop.f32.mrf.mxu0  ;;  %v3265_v39 = vor.u32 %v3567_v24, %v3262_v38 }
 0x11f   :  { %2158 = vmatpush.bf16.msra.mxu1 %v3137_v54  ;;  %2166 = vmatpush.bf16.msra.mxu2 %v3241_v12  ;;  %v3572_v54 = vld [vmem:[#allocation9 + $0x1a4] sm:$0xf0] }
 0x120   :  { %2146 = vmatmul.bf16.vlgmr.msrb.gmra.mxu3 %v3882_v44  ;;  %v3582_v44 = vld [vmem:[#allocation9 + $0x1f4] sm:$0xf0]  ;;  %v3277_v53 = vor.u32 %v3572_v54, %v3276_v51 }
 0x121   :  { %v3317_v9 = vor.u32 %v3582_v44, %v3316_v7 }
 0x123   :  { %v1524_v13 = vpop.f32.mrf.mxu3  ;;  %2125 = vmatpush.bf16.msra.mxu0 %v3317_v9  ;;  %v1513_v22 = vpop.f32.mrf.mxu1  ;;  %2167 = vmatpush.bf16.msra.mxu2 %v3233_v20 }
 0x124   :  { %2159 = vmatmul.bf16.vlgmr.msra.gmra.mxu1 %v1693_v60  ;;  %v1525_v33 = vadd.f32 %v1524_v13, %v1512_v48  ;;  %v3570_v60 = vld [vmem:[#allocation9 + $0x194] sm:$0xf0]  ;;  %v3294_v22 = vld [vmem:[#allocation9 + $0x1c8] sm:$0xf0] }
 0x125   :  { %v3269_v62 = vor.u32 %v3570_v60, %v3268_v42 }
 0x126   :  { %v1539_v19 = vpop.f32.mrf.mxu0  ;;  %v1550_v21 = vpop.f32.mrf.mxu2  ;;  %v1538_v57 = vadd.f32 %v1537_v40, %v1525_v33  ;;  %v3579_v40 = vld [vmem:[#allocation9 + $0x1e4] sm:$0xf] }
 0x127   :  { %2126 = vmatpush.bf16.msra.mxu0 %v3309_v17  ;;  %2168 = vmatpush.bf16.msra.mxu2 %v3225_v27  ;;  %v3313_v12 = vor.u32 %v3579_v40, %v3310_v8  ;;  %v3571_v27 = vld [vmem:[#allocation9 + $0x1a4] sm:$0xf] }
 0x128   :  { %v1551_v35 = vadd.f32 %v1550_v21, %v1538_v57  ;;  %v3575_v21 = vld [vmem:[#allocation9 + $0x1c4] sm:$0xf]  ;;  %v3281_v10 = vor.u32 %v3571_v27, %v3278_v28 }
 0x129   :  { %v3297_v58 = vor.u32 %v3575_v21, %v3294_v22 }
 0x12b   :  { %v1526_v30 = vpop.f32.mrf.mxu3  ;;  %2127 = vmatpush.bf16.msra.mxu0 %v3301_v25  ;;  %2169 = vmatpush.bf16.msra.mxu2 %v3217_v36  ;;  %v3573_v25 = vld [vmem:[#allocation9 + $0x1b4] sm:$0xf] }
 0x12c   :  { %v3289_v26 = vor.u32 %v3573_v25, %v3286_v49  ;;  %v3569_v30 = vld [vmem:[#allocation9 + $0x194] sm:$0xf] }
 0x12e   :  { %v1589_v43 = vpop.f32.mrf.mxu0  ;;  %v1552_v45 = vpop.f32.mrf.mxu2 }
 0x12f   :  { %2128 = vmatpush.bf16.msra.mxu0 %v3293_v31  ;;  %2170 = vmatpush.bf16.msra.mxu2 %v3209_v50  ;;  %v3270_v31 = vld [vmem:[#allocation9 + $0x198] sm:$0xf0] }
 0x130   :  { %v3273_v34 = vor.u32 %v3569_v30, %v3270_v31 }
 0x133   :  { %2129 = vmatpush.bf16.msra.mxu0 %v3285_v46  ;;  %2171 = vmatpush.bf16.msra.mxu2 %v3201_v56 }
 0x136   :  { %v1591_v61 = vpop.f32.mrf.mxu0 }
 0x137   :  { %2130 = vmatpush.bf16.msra.mxu0 %v3277_v53 }
 0x13b   :  { %v1563_v59 = vpop.f32.mrf.mxu1  ;;  %2131 = vmatpush.bf16.msra.mxu0 %v3269_v62 }
 0x13c   :  { %v1564_v4 = vadd.f32 %v1563_v59, %v1551_v35  ;;  %v1760_v35 = vld [vmem:[%s3898_s4] sm:$0x3]  ;;  %s3761_s4 = smov [#allocation12]  }
 0x13d   :  { %v1762_v63 = vperm.slane %v1760_v35, 0  ;;  %s2264_s28 = sshll.u32 %s3761_s4, 4  ;;  %s2265_s28 = int_to_ptr.vmem [resolvable:$true] %s2264_s28 }
 0x13f   :  { %2132 = vmatpush.bf16.msra.mxu0 %v3261_v1 }
 0x142   :  { %v1615_v5 = vpop.f32.mrf.mxu0 }
 0x143   :  { %v1576_v6 = vpop.f32.mrf.mxu3  ;;  %v1565_v44 = vpop.f32.mrf.mxu1  ;;  %2177 = vmatpush.bf16.msrb.mxu0 %v3321_v47  ;;  %v1763_v47 = vperm.slane %v1760_v35, 1 }
 0x144   :  { %v1577_v7 = vadd.f32 %v1576_v6, %v1564_v4 }
 0x146   :  { %v1590_v9 = vadd.f32 %v1589_v43, %v1577_v7  ;;  %v1602_v11 = vpop.f32.mrf.mxu2 }
 0x147   :  { %2178 = vmatpush.bf16.msrb.mxu0 %v3313_v12  ;;  %v1603_v32 = vadd.f32 %v1602_v11, %v307_v29 }
 0x148   :  { %v1686_v13 = vmul.f32 0.01, %v1590_v9 }
 0x149   :  { %v1616_v37 = vadd.f32 %v1615_v5, %v1603_v32 }
 0x14a   :  { %v1690_v16 = vmax.f32 %v1590_v9, %v1686_v13  ;;  %v1617_v17 = vpop.f32.mrf.mxu0 }
 0x14b   :  { %v1578_v19 = vpop.f32.mrf.mxu3  ;;  %2179 = vmatpush.bf16.msrb.mxu0 %v3305_v18  ;;  %v3760_v17 = vmov 0  }
 0x14c   :  { %v1694_v20 = vpack.c.bf16 %v1690_v16, %v1690_v16  ;;  %3594 = vset.pattern.permute.xlu0 %v3760_v17 }
 0x14d   :  { %2233 = vperm.xlu0 %3594, %v2230_v15  }
 0x14e   :  { %2120 = vmatmul.bf16.vlgmr.msrb.gmra.mxu2 %v1694_v20  ;;  %v1604_v23 = vpop.f32.mrf.mxu2 }
 0x14f   :  { %2180 = vmatpush.bf16.msrb.mxu0 %v3297_v58 }
 0x153   :  { %2181 = vmatpush.bf16.msrb.mxu0 %v3289_v26 }
 0x157   :  { %2182 = vmatpush.bf16.msrb.mxu0 %v3281_v10 }
 0x15b   :  { %v1628_v36 = vpop.f32.mrf.mxu1  ;;  %2183 = vmatpush.bf16.msrb.mxu0 %v3273_v34 }
 0x15c   :  { %v1629_v43 = vadd.f32 %v1628_v36, %v1616_v37 }
 0x15e   :  { %2172 = vmatmul.bf16.vlgmr.msra.gmra.mxu2 %v1694_v20  ;;  %v2194_v20 = vld [vmem:[#allocation11] sm:$0xff] }
 0x15f   :  { %2184 = vmatpush.bf16.msrb.mxu0 %v3265_v39  ;;  %v2198_v23 = vunpack.c.l.b16 %v2194_v20  ;;  %v2199_v30 = vunpack.c.h.b16 %v2194_v20 }
 0x161   :  { %v2200_v58 = vpack.c.b16 %v2198_v23, %v2198_v23  ;;  %v2201_v31 = vpack.c.b16 %v2199_v30, %v2199_v30 }
 0x162   :  { %v1667_v46 = vpop.f32.mrf.mxu0 }
 0x163   :  { %v1641_v45 = vpop.f32.mrf.mxu3  ;;  %v1630_v41 = vpop.f32.mrf.mxu1 }
 0x164   :  { %v1642_v48 = vadd.f32 %v1641_v45, %v1629_v43 }
 0x166   :  { %v1654_v50 = vpop.f32.mrf.mxu2 }
 0x167   :  { %v1655_v33 = vadd.f32 %v1654_v50, %v1642_v48 }
 0x169   :  { %v1668_v52 = vadd.f32 %v1667_v46, %v1655_v33 }
 0x16a   :  { %v1669_v54 = vpop.f32.mrf.mxu0 }
 0x16b   :  { %v1643_v51 = vpop.f32.mrf.mxu3  ;;  %v1680_v53 = vpop.f32.mrf.mxu1 }
 0x16c   :  { %v1681_v55 = vadd.f32 %v1680_v53, %v1668_v52 }
 0x16e   :  { %v1656_v61 = vpop.f32.mrf.mxu2  ;;  %v1687_v56 = vmul.f32 0.01, %v1681_v55 }
 0x170   :  { %v1691_v57 = vmax.f32 %v1681_v55, %v1687_v56 }
 0x172   :  { %v1695_v59 = vpack.c.bf16 %v1691_v57, %v1691_v57 }
 0x173   :  { %v1682_v42 = vpop.f32.mrf.mxu1 }
 0x174   :  { %2133 = vmatmul.bf16.vlgmr.msra.gmra.mxu0 %v1695_v59 }
 0x183   :  { %v2095_v60 = vpop.f32.mrf.mxu3 }
 0x184   :  { %2185 = vmatmul.bf16.vlgmr.msrb.gmra.mxu0 %v1695_v59  ;;  %v2096_v0 = vadd.f32 %v2095_v60, %v1762_v63 }
 0x18b   :  { %v2097_v62 = vpop.f32.mrf.mxu3 }
 0x191   :  { %v2108_v1 = vpop.f32.mrf.mxu1 }
 0x192   :  { %v2109_v2 = vadd.f32 %v2108_v1, %v2096_v0 }
 0x199   :  { %v2110_v4 = vpop.f32.mrf.mxu1 }
 0x1a1   :  { %v2160_v7 = vpop.f32.mrf.mxu1 }
 0x1a3   :  { %v2147_v3 = vpop.f32.mrf.mxu3 }
 0x1a4   :  { %v2148_v6 = vadd.f32 %v2147_v3, %v1763_v47 }
 0x1a6   :  { %v2161_v44 = vadd.f32 %v2160_v7, %v2148_v6 }
 0x1a9   :  { %v2162_v40 = vpop.f32.mrf.mxu1 }
 0x1ab   :  { %v2149_v5 = vpop.f32.mrf.mxu3 }
 0x1bf   :  { %v2234_v34 = vpop.permute.xlu0 %2233 }
 0x1c0   :  { %v2236_v37 = vperm.slane %v2234_v34, 0 }
 0x1d1   :  { %v2121_v8 = vpop.f32.mrf.mxu2 }
 0x1d2   :  { %v2122_v13 = vadd.f32 %v2121_v8, %v2109_v2 }
 0x1d9   :  { %v2123_v9 = vpop.f32.mrf.mxu2 }
 0x1e1   :  { %v2173_v11 = vpop.f32.mrf.mxu2 }
 0x1e2   :  { %v2174_v25 = vadd.f32 %v2173_v11, %v2161_v44 }
 0x1e9   :  { %v2175_v12 = vpop.f32.mrf.mxu2 }
 0x1f1   :  { %v2134_v14 = vpop.f32.mrf.mxu0 }
 0x1f2   :  { %v2135_v16 = vadd.f32 %v2134_v14, %v2122_v13 }
 0x1f4   :  { %v2190_v18 = vmul.f32 0.01, %v2135_v16 }
 0x1f6   :  { %v2192_v19 = vmax.f32 %v2135_v16, %v2190_v18 }
 0x1f8   :  { %v2195_v21 = vpack.c.bf16 %v2192_v19, %v2192_v19 }
 0x1f9   :  { %v2136_v22 = vpop.f32.mrf.mxu0 }
 0x1fa   :  { %2211 = vmatpush.bf16.xpose.msra.mxu3 %v2195_v21 }
 0x201   :  { %v2186_v49 = vpop.f32.mrf.mxu0  ;;  %2212 = vmatmul.bf16.vlgmr.msra.gmra.mxu3 %v2200_v58 }
 0x202   :  { %v2187_v26 = vadd.f32 %v2186_v49, %v2174_v25 }
 0x204   :  { %v2191_v27 = vmul.f32 0.01, %v2187_v26 }
 0x206   :  { %v2193_v28 = vmax.f32 %v2187_v26, %v2191_v27 }
 0x208   :  { %v2196_v29 = vpack.c.bf16 %v2193_v28, %v2193_v28 }
 0x209   :  { %v2188_v10 = vpop.f32.mrf.mxu0 }
 0x20a   :  { %2224 = vmatpush.bf16.xpose.msrb.mxu1 %v2196_v29 }
 0x211   :  { %2225 = vmatmul.bf16.vlgmr.msrb.gmra.mxu1 %v2201_v31 }
 0x284   :  { %v2213_v32 = vpop.f32.mrf.mxu3 }
 0x28c   :  { %v2215_v36 = vpop.f32.mrf.mxu3 }
 0x28e   :  { %v2226_v24 = vpop.f32.mrf.mxu1 }
 0x28f   :  { %v2227_v38 = vadd.f32 %v2226_v24, %v2213_v32 }
 0x291   :  { %v2237_v39 = vadd.f32 %v2236_v37, %v2227_v38 }
 0x293   :  { %v3322_v43 = vmul.f32 -1.442695, %v2237_v39 }
 0x295   :  { %3595 = vpow2.f32 %v3322_v43 }
 0x296   :  { %v2228_v45 = vpop.f32.mrf.mxu1 }
 0x29b   :  { %v3596_v46 = vpop.eup %3595 }
 0x29c   :  { %v2241_v48 = vadd.f32 1.0, %v3596_v46 }
 0x29e   :  { %3597 = vrcp.f32 %v2241_v48  ;;  %v2253_v51 = vand.u32 2147483648, %v2241_v48  ;;  %v2251_v52 = vand.u32 2147483647, %v2241_v48  ;;  %vm2247_vm2 = vweird.f32 %v2241_v48 }
 0x2a0   :  { %v2254_v55 = vor.u32 1.1754944e-38, %v2253_v51  ;;  %vm2252_vm5 = vcmp.eq.f32.partialorder %v2251_v52, 8.507059e+37 }
 0x2a4   :  { %v3598_v41 = vpop.eup %3597 }
 0x2a5   :  { %v2243_v50 = vmul.f32 %v3598_v41, %v2241_v48  ;;  %vm2248_vm1 = vweird.f32 %v3598_v41 }
 0x2a6   :  { %vm2249_vm3 = vmor %vm2247_vm2, %vm2248_vm1 }
 0x2a7   :  { %v2244_v33 = vsub.f32 1.0, %v2243_v50 }
 0x2a9   :  { %v2245_v54 = vmul.f32 %v3598_v41, %v2244_v33 }
 0x2ab   :  { %v2246_v53 = vadd.f32 %v3598_v41, %v2245_v54 }
 0x2ad   :  { %v2250_v61 = vsel %vm2249_vm3, %v3598_v41, %v2246_v53 }
 0x2ae   :  { %v2255_v56 = vsel %vm2252_vm5, %v2254_v55, %v2250_v61 }
 0x2af   :  { %2258 = vst.msk [vmem:[#allocation12] sm:$0x1] %vm2257_vm4, %v2255_v56 }
 0x2b0   :  { %2269 = dma.vmem_to_hbm [thread:$0]  %s2265_s28, 16, %s2267_s8, [#allocation5]  }
 0x2b1   :  { %3749 = dma.done.wait [#allocation5], 16  }
 0x2b2   :  { %3750 = vsyncadd [#allocation5], 4294967280 }
 0x2b3   :  { %2274 = vsyncpa [#allocation4], 1 }
 0x2b4   :  { %2275 = vsyncpa [#allocation7], 1 }
 0x2b5   :  { %2276 = vsyncpa [#allocation10], 1 }
 0x2b6   :  { %2277 = vsyncpa [#allocation5], 1 }

</bundles_post_ra>
